<compile_context>
chip_gen: v7x
topology: tpu7x:2x2x1
jax: 0.10.0
libtpu: 0.0.40
codegen_flags: <defaults>
</compile_context>

<pallas_src>
import functools
import math

import jax
import jax.numpy as jnp
from jax.experimental import pallas as pl
from jax.experimental.pallas import tpu as pltpu

LANE = 128
_BF16 = jnp.bfloat16


def _round_up(x, m):
    return ((x + m - 1) // m) * m


def _pad2(a, rows, cols, dtype):
    out = jnp.zeros((rows, cols), dtype)
    return out.at[: a.shape[0], : a.shape[1]].set(a.astype(dtype))


# ---------------------------------------------------------------------------
# Kernels
# ---------------------------------------------------------------------------
def gcn_layer_kernel(a_ref, h_ref, w_ref, b_ref, o_ref, acc_ref, *,
                     apply_relu, block_k):
    """One GCN layer row tile: o[i] = relu?((sum_k A[i,k] @ H[k]) @ W + b).

    Correctness of the output write relies on the reduction axis k being the
    LAST grid axis and marked "arbitrary" (ordered); the row axis i is
    "parallel".
    """
    k = pl.program_id(1)

    @pl.when(k == 0)
    def _():
        acc_ref[...] = jnp.zeros_like(acc_ref)

    # Propagation: dominant O(N^2 * F) matmul.  A tile and the resident H
    # slab are both bf16 already (no per-step VPU cast); accumulate in f32.
    row0 = pl.multiple_of(k * block_k, block_k)
    h_blk = h_ref[pl.ds(row0, block_k), :]
    acc_ref[...] += jnp.dot(a_ref[...], h_blk,
                            preferred_element_type=jnp.float32)

    @pl.when(k == pl.num_programs(1) - 1)
    def _():
        # Feature transform + bias (+ relu) fused into the finalize step
        # (propagate-before-transform; identical to A @ (H @ W)).  bf16 x
        # bf16 MXU matmul with f32 accumulation.
        y = jnp.dot(acc_ref[...].astype(w_ref.dtype), w_ref[...],
                    preferred_element_type=jnp.float32)
        y = y + b_ref[...]
        if apply_relu:
            y = jnp.maximum(y, 0.0)
        o_ref[...] = y.astype(o_ref.dtype)


def gcn_pool_layer_kernel(a_ref, h_ref, w_ref, b_ref, p_ref, o_ref, acc_ref,
                          *, block_k):
    """Layer 3 + fused global_mean_pool.

    Per row tile i the finalize computes y = (sum_k A[i,k] @ H[k]) @ W + b
    and emits the pooled partial P[:, i-tile] @ y into its own output slot
    (no cross-row-tile accumulation, so the "parallel" row axis stays safe on
    v7x's two TensorCores).  Partials are summed in XLA.
    """
    k = pl.program_id(1)

    @pl.when(k == 0)
    def _():
        acc_ref[...] = jnp.zeros_like(acc_ref)

    row0 = pl.multiple_of(k * block_k, block_k)
    h_blk = h_ref[pl.ds(row0, block_k), :]
    acc_ref[...] += jnp.dot(a_ref[...], h_blk,
                            preferred_element_type=jnp.float32)

    @pl.when(k == pl.num_programs(1) - 1)
    def _():
        y = jnp.dot(acc_ref[...].astype(w_ref.dtype), w_ref[...],
                    preferred_element_type=jnp.float32)
        y = y + b_ref[...]
        pooled = jnp.dot(p_ref[...], y.astype(p_ref.dtype),
                         preferred_element_type=jnp.float32)
        o_ref[...] = pooled[None, :, :]


# ---------------------------------------------------------------------------
# VMEM budgeting
# ---------------------------------------------------------------------------
def _vmem_limit_bytes(n_p, tile_m, tile_k, fin, fout, g_p=0):
    """Explicit scoped-VMEM budget (defaults: 16 MiB v5e / 32 MiB v6e,v7x)."""
    bf16, f32 = 2, 4
    est = (2 * tile_m * tile_k * bf16      # A tile (double buffered)
           + 2 * n_p * fin * bf16          # resident H slab (2 bufs, default)
           + 2 * fin * fout * bf16         # resident W
           + 2 * fout * f32                # bias
           + tile_m * fin * f32            # f32 accumulator scratch
           + 2 * tile_m * fout * bf16      # output tile
           + 2 * g_p * tile_m * bf16       # P row panel (pool-fused layer)
           + 2 * g_p * fout * f32)         # pooled partial output
    # 1.5x headroom; keep comfortably under v7x's 64 MiB physical VMEM.
    return min(max(int(est * 1.5), 32 * 1024 * 1024), 56 * 1024 * 1024)


# ---------------------------------------------------------------------------
# pallas_call wrappers
# ---------------------------------------------------------------------------
def gcn_layer(a_pad, h_pad, w_pad, b_pad, *, apply_relu, tile_m, tile_k):
    n_p = a_pad.shape[0]
    fin = h_pad.shape[1]
    fout = w_pad.shape[1]
    grid = (n_p // tile_m, n_p // tile_k)

    kernel = functools.partial(gcn_layer_kernel, apply_relu=apply_relu,
                               block_k=tile_k)

    return pl.pallas_call(
        kernel,
        out_shape=jax.ShapeDtypeStruct((n_p, fout), _BF16),
        grid_spec=pltpu.PrefetchScalarGridSpec(
            num_scalar_prefetch=0,
            grid=grid,
            in_specs=[
                pl.BlockSpec((tile_m, tile_k), lambda i, k: (i, k)),  # A tile
                pl.BlockSpec((n_p, fin), lambda i, k: (0, 0)),        # H slab
                pl.BlockSpec((fin, fout), lambda i, k: (0, 0)),       # W
                pl.BlockSpec((1, fout), lambda i, k: (0, 0)),         # bias
            ],
            out_specs=pl.BlockSpec((tile_m, fout), lambda i, k: (i, 0)),
            scratch_shapes=[pltpu.VMEM((tile_m, fin), jnp.float32)],
        ),
        compiler_params=pltpu.CompilerParams(
            dimension_semantics=("parallel", "arbitrary"),
            vmem_limit_bytes=_vmem_limit_bytes(n_p, tile_m, tile_k, fin, fout),
        ),
    )(a_pad, h_pad, w_pad, b_pad)


def gcn_pool_layer(a_pad, h_pad, w_pad, b_pad, p_pad, *, tile_m, tile_k):
    n_p = a_pad.shape[0]
    fin = h_pad.shape[1]
    fout = w_pad.shape[1]
    g_p = p_pad.shape[0]
    n_row_tiles = n_p // tile_m
    grid = (n_row_tiles, n_p // tile_k)

    kernel = functools.partial(gcn_pool_layer_kernel, block_k=tile_k)

    return pl.pallas_call(
        kernel,
        out_shape=jax.ShapeDtypeStruct((n_row_tiles, g_p, fout), jnp.float32),
        grid_spec=pltpu.PrefetchScalarGridSpec(
            num_scalar_prefetch=0,
            grid=grid,
            in_specs=[
                pl.BlockSpec((tile_m, tile_k), lambda i, k: (i, k)),  # A tile
                pl.BlockSpec((n_p, fin), lambda i, k: (0, 0)),        # H slab
                pl.BlockSpec((fin, fout), lambda i, k: (0, 0)),       # W
                pl.BlockSpec((1, fout), lambda i, k: (0, 0)),         # bias
                pl.BlockSpec((g_p, tile_m), lambda i, k: (0, i)),     # P panel
            ],
            out_specs=pl.BlockSpec((1, g_p, fout), lambda i, k: (i, 0, 0)),
            scratch_shapes=[pltpu.VMEM((tile_m, fin), jnp.float32)],
        ),
        compiler_params=pltpu.CompilerParams(
            dimension_semantics=("parallel", "arbitrary"),
            vmem_limit_bytes=_vmem_limit_bytes(n_p, tile_m, tile_k, fin, fout,
                                               g_p=g_p),
        ),
    )(a_pad, h_pad, w_pad, b_pad, p_pad)


# ---------------------------------------------------------------------------
# One-time preparation (hoisted out of the per-forward path)
# ---------------------------------------------------------------------------
def prepare_inputs(A_norm, P, x, *, tile_m=512, tile_k=512):
    """Pad + cast A, P, x once so the forward pass does no XLA re-layout.

    tile_m/tile_k defaults target v5e/v6e; on v7x cap tile_m so that
    n_p // tile_m >= 2 row tiles remain for the two TensorCores.
    """
    n = x.shape[0]
    g = P.shape[0]

    # Clamp tiles for small graphs, keep them multiples of 128 lanes.
    n_min = _round_up(n, LANE)
    tile_m = max(LANE, min(tile_m, n_min))
    tile_k = max(LANE, min(tile_k, n_min))
    n_p = _round_up(n, math.lcm(tile_m, tile_k))

    fin_p = _round_up(x.shape[1], LANE)
    g_p = _round_up(max(g, 8), 8)

    # Zero-padded nodes never leak into real rows: their A columns and P
    # columns are zero, and padded feature channels have zero weights/bias.
    a_pad = _pad2(A_norm, n_p, n_p, _BF16)
    x_pad = _pad2(x, n_p, fin_p, _BF16)
    p_pad = _pad2(P, g_p, n_p, _BF16)

    meta = dict(n=n, g=g, n_p=n_p, fin_p=fin_p, g_p=g_p,
                tile_m=tile_m, tile_k=tile_k)
    return a_pad, p_pad, x_pad, meta


def prepare_params(params):
    """Pad weights to 128 lanes; weights bf16 (MXU path), biases f32."""
    w1, b1, w2, b2, w3, b3, wl, bl = params
    fin_p = _round_up(w1.shape[0], LANE)
    hid = w1.shape[1]
    hid_p = _round_up(hid, LANE)
    return dict(
        w1=_pad2(w1, fin_p, hid_p, _BF16), b1=_pad2(b1, 1, hid_p, jnp.float32),
        w2=_pad2(w2, hid_p, hid_p, _BF16), b2=_pad2(b2, 1, hid_p, jnp.float32),
        w3=_pad2(w3, hid_p, hid_p, _BF16), b3=_pad2(b3, 1, hid_p, jnp.float32),
        wl=wl.astype(jnp.float32), bl=bl.astype(jnp.float32),
        hid=hid,
    )


# ---------------------------------------------------------------------------
# Forward pass
# ---------------------------------------------------------------------------
def seal_gnn_forward(a_pad, p_pad, x_pad, pparams, meta):
    tm, tk = meta["tile_m"], meta["tile_k"]

    h = gcn_layer(a_pad, x_pad, pparams["w1"], pparams["b1"],
                  apply_relu=True, tile_m=tm, tile_k=tk)
    h = gcn_layer(a_pad, h, pparams["w2"], pparams["b2"],
                  apply_relu=True, tile_m=tm, tile_k=tk)
    partials = gcn_pool_layer(a_pad, h, pparams["w3"], pparams["b3"], p_pad,
                              tile_m=tm, tile_k=tk)

    pooled = partials.sum(axis=0)                    # [g_p, hid_p] f32

    # dropout: eval-mode identity.
    # Final Linear(hidden, 1) is negligible flops and would force a 1-lane
    # masked-store output inside a kernel, so it stays in plain XLA.
    g, hid = meta["g"], pparams["hid"]
    return jnp.dot(pooled[:g, :hid], pparams["wl"]) + pparams["bl"]


# ---------------------------------------------------------------------------
# Glue: dense GCN-normalized adjacency, mean-pool matrix, params, reference
# ---------------------------------------------------------------------------
def build_gcn_norm_adj(edge_index, num_nodes):
    """Dense D^{-1/2} (A + I) D^{-1/2}, matching PyG gcn_norm with self-loops."""
    src, dst = edge_index
    A = jnp.zeros((num_nodes, num_nodes), jnp.float32)
    A = A.at[dst, src].add(1.0)                 # messages src -> dst
    A = A + jnp.eye(num_nodes, dtype=jnp.float32)
    deg = A.sum(axis=1)
    dinv = jnp.where(deg > 0, 1.0 / jnp.sqrt(deg), 0.0)
    return dinv[:, None] * A * dinv[None, :]


def build_mean_pool_matrix(batch, num_graphs):
    onehot = (batch[None, :] == jnp.arange(num_graphs)[:, None]).astype(jnp.float32)
    counts = onehot.sum(axis=1, keepdims=True)
    return onehot / jnp.maximum(counts, 1.0)    # [G, N]


def init_params(key, in_channels, hidden_channels):
    ks = jax.random.split(key, 4)

    def glorot(k, fan_in, fan_out):
        scale = jnp.sqrt(2.0 / (fan_in + fan_out))
        return (scale * jax.random.normal(k, (fan_in, fan_out))).astype(jnp.float32)

    w1 = glorot(ks[0], in_channels, hidden_channels)
    b1 = jnp.zeros((1, hidden_channels), jnp.float32)
    w2 = glorot(ks[1], hidden_channels, hidden_channels)
    b2 = jnp.zeros((1, hidden_channels), jnp.float32)
    w3 = glorot(ks[2], hidden_channels, hidden_channels)
    b3 = jnp.zeros((1, hidden_channels), jnp.float32)
    wl = glorot(ks[3], hidden_channels, 1)
    bl = jnp.zeros((1, 1), jnp.float32)
    return (w1, b1, w2, b2, w3, b3, wl, bl)


def seal_gnn_reference(A_norm, P, x, params):
    """Pure-JAX f32 reference of the same forward math."""
    w1, b1, w2, b2, w3, b3, wl, bl = params
    hi = jax.lax.Precision.HIGHEST
    h = jnp.maximum(jnp.dot(A_norm, jnp.dot(x, w1, precision=hi),
                            precision=hi) + b1, 0.0)
    h = jnp.maximum(jnp.dot(A_norm, jnp.dot(h, w2, precision=hi),
                            precision=hi) + b2, 0.0)
    h = jnp.dot(A_norm, jnp.dot(h, w3, precision=hi), precision=hi) + b3
    pooled = jnp.dot(P, h, precision=hi)
    return jnp.dot(pooled, wl, precision=hi) + bl


if __name__ == "__main__":
    key = jax.random.PRNGKey(0)
    k_x, k_p = jax.random.split(key, 2)

    # Small SEAL-style batch: 2 subgraphs, 300 nodes each.  With 256-wide
    # tiles N pads 600 -> 768, giving a real (3, 3) layer grid that exercises
    # K-accumulation and leaves >= 2 "parallel" row tiles (v7x guidance).
    # Production defaults are tile_m = tile_k = 512.
    num_nodes = 600
    in_channels = 8
    hidden_channels = 32
    num_graphs = 2
    nodes_per_graph = num_nodes // num_graphs

    x = jax.random.normal(k_x, (num_nodes, in_channels), dtype=jnp.float32)

    # Deterministic undirected ring inside each subgraph.
    srcs, dsts = [], []
    for gidx in range(num_graphs):
        idx = jnp.arange(nodes_per_graph, dtype=jnp.int32) + gidx * nodes_per_graph
        nxt = jnp.roll(idx, -1)
        srcs += [idx, nxt]
        dsts += [nxt, idx]
    edge_index = jnp.stack([jnp.concatenate(srcs), jnp.concatenate(dsts)], axis=0)
    batch = jnp.repeat(jnp.arange(num_graphs, dtype=jnp.int32), nodes_per_graph)

    A_norm = build_gcn_norm_adj(edge_index, num_nodes)
    P = build_mean_pool_matrix(batch, num_graphs)
    params = init_params(k_p, in_channels, hidden_channels)

    # One-time padding / bf16 casting (hoisted out of the per-forward path).
    a_pad, p_pad, x_pad, meta = prepare_inputs(A_norm, P, x,
                                               tile_m=256, tile_k=256)
    pparams = prepare_params(params)

    out = seal_gnn_forward(a_pad, p_pad, x_pad, pparams, meta)
    out = jax.block_until_ready(out)

    ref = seal_gnn_reference(A_norm, P, x, params)
    assert out.shape == (num_graphs, 1)
    # Tolerance covers bf16 adjacency/activation/weight storage, whose error
    # compounds over the 3 GCN layers (acceptable for eval; documented).
    assert jnp.allclose(out, ref, atol=7.5e-2, rtol=7.5e-2)

    print("KERNEL_OK")
</pallas_src>

<mosaic_0001>
module attributes {stable_mosaic.version = 11 : i64} {
  func.func @gcn_layer_kernel(%arg0: i32, %arg1: i32, %arg2: memref<256x256xbf16, #tpu.memory_space<vmem>>, %arg3: memref<768x128xbf16, #tpu.memory_space<vmem>>, %arg4: memref<128x128xbf16, #tpu.memory_space<vmem>>, %arg5: memref<1x128xf32, #tpu.memory_space<vmem>>, %arg6: memref<256x128xbf16, #tpu.memory_space<vmem>>, %arg7: memref<256x128xf32, #tpu.memory_space<vmem>>) attributes {dimension_semantics = [#tpu.dimension_semantics<parallel>, #tpu.dimension_semantics<arbitrary>], iteration_bounds = array<i64: 3, 3>, scalar_prefetch = 0 : i64, scratch_operands = 1 : i64, tpu.core_type = #tpu.core_type<tc>, window_params = [{transform_indices = @transform_0, window_bounds = array<i64: 256, 256>}, {pipeline_mode = #tpu.pipeline_mode<synchronous>, transform_indices = @transform_1, window_bounds = array<i64: 768, 128>}, {pipeline_mode = #tpu.pipeline_mode<synchronous>, transform_indices = @transform_2, window_bounds = array<i64: 128, 128>}, {pipeline_mode = #tpu.pipeline_mode<synchronous>, transform_indices = @transform_3, window_bounds = array<i64: 1, 128>}, {transform_indices = @transform_4, window_bounds = array<i64: 256, 128>}]} {
    %c0_i32 = arith.constant 0 : i32
    %0 = arith.cmpi eq, %arg1, %c0_i32 : i32
    %1 = arith.extui %0 : i1 to i32
    %c0_i32_0 = arith.constant 0 : i32
    %2 = arith.cmpi ne, %1, %c0_i32_0 : i32
    scf.if %2 {
      %cst_8 = arith.constant 0.000000e+00 : f32
      %15 = vector.broadcast %cst_8 : f32 to vector<256x128xf32>
      %c0_9 = arith.constant 0 : index
      %c0_10 = arith.constant 0 : index
      %16 = vector.load %arg7[%c0_9, %c0_10] : memref<256x128xf32, #tpu.memory_space<vmem>>, vector<256x128xf32>
      tpu.vector_store %arg7[%c0_9, %c0_10], %15 {strides = array<i32>} : memref<256x128xf32, #tpu.memory_space<vmem>>, vector<256x128xf32>,
    } else {
    }
    %c256_i32 = arith.constant 256 : i32
    %3 = arith.muli %arg1, %c256_i32 : i32
    %4 = tpu.assume_multiple %3, 256 : i32
    %5 = arith.index_cast %4 : i32 to index
    %c0 = arith.constant 0 : index
    %6 = vector.load %arg3[%5, %c0] : memref<768x128xbf16, #tpu.memory_space<vmem>>, vector<256x128xbf16>
    %c0_1 = arith.constant 0 : index
    %c0_2 = arith.constant 0 : index
    %7 = vector.load %arg7[%c0_1, %c0_2] : memref<256x128xf32, #tpu.memory_space<vmem>>, vector<256x128xf32>
    %c0_3 = arith.constant 0 : index
    %c0_4 = arith.constant 0 : index
    %8 = vector.load %arg2[%c0_3, %c0_4] : memref<256x256xbf16, #tpu.memory_space<vmem>>, vector<256x256xbf16>
    %cst = arith.constant dense<0.000000e+00> : vector<256x128xf32>
    %9 = tpu.matmul %8, %6, %cst {dimension_numbers = #tpu.dot_dimension_numbers<[1], [0], [0], [1], [0, 0, 1, 1], [], []>} : vector<256x256xbf16>, vector<256x128xbf16>, vector<256x128xf32> -> vector<256x128xf32>
    %10 = arith.addf %7, %9 : vector<256x128xf32>
    %c0_5 = arith.constant 0 : index
    %c0_6 = arith.constant 0 : index
    %11 = vector.load %arg7[%c0_5, %c0_6] : memref<256x128xf32, #tpu.memory_space<vmem>>, vector<256x128xf32>
    tpu.vector_store %arg7[%c0_5, %c0_6], %10 {strides = array<i32>} : memref<256x128xf32, #tpu.memory_space<vmem>>, vector<256x128xf32>,
    %c2_i32 = arith.constant 2 : i32
    %12 = arith.cmpi eq, %arg1, %c2_i32 : i32
    %13 = arith.extui %12 : i1 to i32
    %c0_i32_7 = arith.constant 0 : i32
    %14 = arith.cmpi ne, %13, %c0_i32_7 : i32
    scf.if %14 {
      %c0_8 = arith.constant 0 : index
      %c0_9 = arith.constant 0 : index
      %15 = vector.load %arg7[%c0_8, %c0_9] : memref<256x128xf32, #tpu.memory_space<vmem>>, vector<256x128xf32>
      %16 = arith.truncf %15 : vector<256x128xf32> to vector<256x128xbf16>
      %c0_10 = arith.constant 0 : index
      %c0_11 = arith.constant 0 : index
      %17 = vector.load %arg4[%c0_10, %c0_11] : memref<128x128xbf16, #tpu.memory_space<vmem>>, vector<128x128xbf16>
      %cst_12 = arith.constant dense<0.000000e+00> : vector<256x128xf32>
      %18 = tpu.matmul %16, %17, %cst_12 {dimension_numbers = #tpu.dot_dimension_numbers<[1], [0], [0], [1], [0, 0, 1, 1], [], []>} : vector<256x128xbf16>, vector<128x128xbf16>, vector<256x128xf32> -> vector<256x128xf32>
      %c0_13 = arith.constant 0 : index
      %c0_14 = arith.constant 0 : index
      %19 = vector.load %arg5[%c0_13, %c0_14] : memref<1x128xf32, #tpu.memory_space<vmem>>, vector<1x128xf32>
      %20 = vector.broadcast %19 : vector<1x128xf32> to vector<256x128xf32>
      %21 = arith.addf %18, %20 : vector<256x128xf32>
      %cst_15 = arith.constant 0.000000e+00 : f32
      %22 = vector.broadcast %cst_15 : f32 to vector<256x128xf32>
      %23 = arith.maximumf %21, %22 : vector<256x128xf32>
      %24 = arith.truncf %23 : vector<256x128xf32> to vector<256x128xbf16>
      %c0_16 = arith.constant 0 : index
      %c0_17 = arith.constant 0 : index
      %25 = vector.load %arg6[%c0_16, %c0_17] : memref<256x128xbf16, #tpu.memory_space<vmem>>, vector<256x128xbf16>
      tpu.vector_store %arg6[%c0_16, %c0_17], %24 {strides = array<i32>} : memref<256x128xbf16, #tpu.memory_space<vmem>>, vector<256x128xbf16>,
    } else {
    }
    return
  }
  func.func @transform_0(%arg0: i32, %arg1: i32) -> (i32, i32) {
    %c0_i32 = arith.constant 0 : i32
    return %arg0, %arg1 : i32, i32
  }
  func.func @transform_1(%arg0: i32, %arg1: i32) -> (i32, i32) {
    %c0_i32 = arith.constant 0 : i32
    %c0_i32_0 = arith.constant 0 : i32
    %c0_i32_1 = arith.constant 0 : i32
    return %c0_i32, %c0_i32_0 : i32, i32
  }
  func.func @transform_2(%arg0: i32, %arg1: i32) -> (i32, i32) {
    %c0_i32 = arith.constant 0 : i32
    %c0_i32_0 = arith.constant 0 : i32
    %c0_i32_1 = arith.constant 0 : i32
    return %c0_i32, %c0_i32_0 : i32, i32
  }
  func.func @transform_3(%arg0: i32, %arg1: i32) -> (i32, i32) {
    %c0_i32 = arith.constant 0 : i32
    %c0_i32_0 = arith.constant 0 : i32
    %c0_i32_1 = arith.constant 0 : i32
    return %c0_i32, %c0_i32_0 : i32, i32
  }
  func.func @transform_4(%arg0: i32, %arg1: i32) -> (i32, i32) {
    %c0_i32 = arith.constant 0 : i32
    %c0_i32_0 = arith.constant 0 : i32
    return %arg0, %c0_i32 : i32, i32
  }
}

</mosaic_0001>

<bundles_post_ra>
// kernel: tpu_custom_call.1
= control target key start
LH: loop header
LB: loop body
LE: loop exit
PB: predicated region body
PF: predicated region fallthrough
CT: control target
= control target key end

     0   :  { %s2901_s0 = inlined_call_operand.hbm [shape: bf16[768,768], index: 0, kind: input, shape index: {}]   ;;  %s2902_s1 = inlined_call_operand.hbm [shape: bf16[768,128], index: 1, kind: input, shape index: {}]   ;;  %s2903_s2 = inlined_call_operand.hbm [shape: bf16[128,128], index: 2, kind: input, shape index: {}]   ;;  %s2904_s3 = inlined_call_operand.hbm [shape: f32[1,128], index: 3, kind: input, shape index: {}]   ;;  %s2905_s4 = inlined_call_operand.hbm [shape: bf16[768,128], index: 4, kind: output, shape index: {}]  }
   0x1   :  { %2919 = sst [smem:[#allocation20_spill]] %s2902_s1 }
   0x2   :  { %2920 = sst [smem:[#allocation21_spill]] %s2903_s2 }
   0x3   :  { %2921 = sst [smem:[#allocation22_spill]] %s2905_s4 }
   0x4   :  { %9 = vsyncpa [#allocation4], 0 }
   0x5   :  { %11 = vsyncpa [#allocation4 + $0x1], 0 }
   0x6   :  { %12 = vsyncpa [#allocation7], 0 }
   0x7   :  { %13 = vsyncpa [#allocation10], 0 }
   0x8   :  { %14 = vsyncpa [#allocation5], 0 }
   0x9   :  { %16 = vsyncpa [#allocation5 + $0x1], 0  ;;  %s2463_s15 = smov 0   ;;  %s2465_s16 = smov 0  }
   0xa   :  { %s2467_s17 = smov 0   ;;  %s2469_s18 = smov 0  }
   0xb   :  { %s2471_s19 = smov 0   ;;  %s2473_s20 = smov 0  }
   0xc   :  { %s2475_s21 = smov 0   ;;  %s2477_s22 = smov 0  }
   0xd   :  { %s2479_s23 = smov 0   ;;  %s2481_s24 = smov 0  }
   0xe   :  { %s2483_s25 = smov 0  }
   0xf LB: > { %2922 = sst [smem:[#allocation16_spill]] %s2383_s15  ;;  %s1505_s26 = sadd.s32 4294967295, %s2423_s25   ;;  %s2423_s25 = sphi %s2483_s25, %s22_s25   ;;  %s2419_s24 = sphi %s2481_s24, %s2959_s24   ;;  %s2415_s23 = sphi %s2479_s23, %s2958_s23   ;;  %s2411_s22 = sphi %s2477_s22, %s2957_s22   ;;  %s2407_s21 = sphi %s2475_s21, %s2956_s21   ;;  %s2403_s20 = sphi %s2473_s20, %s2955_s20   ;;  %s2399_s19 = sphi %s2471_s19, %s2954_s19   ;;  %s2395_s18 = sphi %s2469_s18, %s2953_s18   ;;  %s2391_s17 = sphi %s2467_s17, %s2952_s17   ;;  %s2387_s16 = sphi %s2465_s16, %s2951_s16   ;;  %s2383_s15 = sphi %s2463_s15, %s2950_s15  }
  0x10   : > { %2923 = sst [smem:[#allocation17_spill]] %s2423_s25  ;;  %s1506_s27 = sadd.s32 4294967294, %s2423_s25  }
  0x11   : > { %p50_p0 = scmp.ne.s32.totalorder %s2403_s20, %s2399_s19  ;;  %p51_p1 = scmp.eq.s32.totalorder %s2423_s25, 0 }
  0x12   : > { %p56_p2 = scmp.ne.s32.totalorder %s2399_s19, %s2395_s18  ;;  %p2523_p3 = scmp.eq.s32.totalorder %s1505_s26, 0 }
  0x13   : > { %p2528_p4 = por %p51_p1, %p50_p0  ;;  %p142_p5 = scmp.ne.s32.totalorder %s2391_s17, %s2387_s16 }
  0x14   : > { %s2924_s29 = scalar_select %p2523_p3, 1, 0 }
  0x15   : > { %p2536_p6 = por %p2523_p3, %p56_p2  ;;  %p143_p7 = scmp.eq.s32.totalorder %s1505_s26, 8 }
  0x16   : > { %p148_p8 = scmp.ne.s32.totalorder %s2387_s16, %s2383_s15  ;;  %p149_p9 = scmp.eq.s32.totalorder %s1506_s27, 8 }
  0x17   : > { %s2926_s6 = scalar_select %p2536_p6, 1, 0 }
  0x18   : > { %p2542_p10 = por %p143_p7, %p142_p5  ;;  %p1507_p11 = scmp.ge.s32.totalorder %s2423_s25, 1 }
  0x19   : > { %p2547_p12 = por %p149_p9, %p148_p8  ;;  %p156_p13 = scmp.lt.s32.totalorder %s2423_s25, 10 }
  0x1a   : > { %s2927_s7 = scalar_select %p2542_p10, 1, 0 }
  0x1b   : > { %s2929_s8 = scalar_select %p2547_p12, 1, 0 }
  0x1c   : > { %2928 = sst [smem:[#allocation18_spill]] %s2927_s7  ;;  %p2552_p0 = pnand %p1507_p11, %p156_p13 }
  0x1d   : > { %2930 = sst [smem:[#allocation19_spill]] %s2929_s8  ;;  %s2425_s10 = smov [#allocation6]  }
  0x1e   : > { %s2931_s9 = scalar_select %p2552_p0, 1, 0 }
  0x1f   : > { %s168_s11 = sshll.u32 %s2425_s10, 4  ;;  %p1982_p1 = pneg %p2552_p0  ;;  %s2556_s11 = int_to_ptr.vmem [resolvable:$true] %s168_s11 }
  0x20   : > { %p2003_p2 = scmp.lt.s32.totalorder %s2423_s25, 9  ;;  %s2426_s14 = smov [#allocation8]  }
  0x21   : > { %p2563_p5 = pnand %p1982_p1, %p2523_p3  ;;  %s181_s18 = sshll.u32 %s2426_s14, 4  ;;  %s2573_s18 = int_to_ptr.vmem [resolvable:$true] %s181_s18 }
  0x22   : > { %p2569_p7 = pnand %p2003_p2, %p2528_p4  ;;  %s2934_s1 = sld [smem:[#allocation20_spill]] }
  0x23   : > { %p2583_p9 = pneg %p2563_p5 }
  0x24   : > { %s2933_s13 = scalar_select %p2569_p7, 1, 0 }
  0x28   : > { %s2179_s10 = scalar_lea.hbm %s2934_s1, 6144 }
  0x29   : > { %p2180_p8 = scmp.ne.s32.totalorder %s2934_s1, %s2179_s10  ;;  %p2186_p13 = scmp.lt.u32.totalorder %s2179_s10, %s2934_s1 }
  0x2b   : > { %p2182_p4 = pnand %p2583_p9, %p2180_p8 }
  0x2d   : > { %p2183_p11 = pneg %p2182_p4 }
  0x2f   : > { %p2188_p1 = pnand %p2186_p13, %p2183_p11 }
  0x31   : > { %2191 = shalt.err (!%p2188_p1)
}
  0x32   : > { %s2192_s28 = scalar_lea.vmem %s2556_s11, 6144  ;;  %p2200_p3 = scmp.lt.s32.totalorder %s2556_s11, %s2556_s11 }
  0x33   : > { %p2193_p2 = scmp.ne.s32.totalorder %s2556_s11, %s2192_s28  ;;  %p2201_p6 = scmp.lt.s32.totalorder %s2192_s28, %s2192_s28 }
  0x35   : > { %p2195_p12 = pnand %p2193_p2, %p2583_p9  ;;  %p2202_p8 = por %p2201_p6, %p2200_p3 }
  0x37   : > { %p2196_p10 = pneg %p2195_p12 }
  0x39   : > { %p2203_p4 = pnand %p2202_p8, %p2196_p10 }
  0x3b   : > { %2206 = shalt.err (!%p2203_p4)
}
  0x3c   : > { %s2427_s30 = smov 64   ;;  %s2428_s8 = smov 4  }
  0x3d   : > { %1985 = dma.hbm_to_vmem [thread:$0]  (!%p2563_p5), %s2934_s1, 6144, %s2556_s11, [#allocation7], %s2427_s30, %s2427_s30, %s2428_s8  }
  0x3e   : > { %s2936_s2 = sld [smem:[#allocation21_spill]] }
  0x44   : > { %s2207_s15 = scalar_lea.hbm %s2936_s2, 1024 }
  0x45   : > { %p2208_p3 = scmp.ne.s32.totalorder %s2936_s2, %s2207_s15  ;;  %p2214_p12 = scmp.lt.u32.totalorder %s2207_s15, %s2936_s2 }
  0x47   : > { %p2210_p6 = pnand %p2208_p3, %p2583_p9 }
  0x49   : > { %p2211_p10 = pneg %p2210_p6 }
  0x4b   : > { %p2216_p11 = pnand %p2214_p12, %p2211_p10 }
  0x4d   : > { %2219 = shalt.err (!%p2216_p11)
}
  0x4e   : > { %s2220_s11 = scalar_lea.vmem %s2573_s18, 1024  ;;  %p2228_p8 = scmp.lt.s32.totalorder %s2573_s18, %s2573_s18 }
  0x4f   : > { %p2221_p13 = scmp.ne.s32.totalorder %s2573_s18, %s2220_s11  ;;  %p2229_p4 = scmp.lt.s32.totalorder %s2220_s11, %s2220_s11 }
  0x51   : > { %p2223_p1 = pnand %p2221_p13, %p2583_p9  ;;  %p2230_p3 = por %p2229_p4, %p2228_p8 }
  0x53   : > { %p2224_p2 = pneg %p2223_p1 }
  0x55   : > { %p2231_p6 = pnand %p2230_p3, %p2224_p2 }
  0x57   : > { %2234 = shalt.err (!%p2231_p6)
}
  0x58   : > { %1988 = dma.hbm_to_vmem [thread:$0]  (!%p2563_p5), %s2936_s2, 1024, %s2573_s18, [#allocation7], %s2427_s30, %s2427_s30, %s2428_s8  }
  0x59   : > { %s2429_s25 = smov [#allocation9]   ;;  %s2235_s10 = scalar_lea.hbm %s2904_s3, 16 }
  0x5a   : > { %s195_s7 = sshll.u32 %s2429_s25, 4  ;;  %p2236_p10 = scmp.ne.s32.totalorder %s2904_s3, %s2235_s10  ;;  %s196_s7 = int_to_ptr.vmem [resolvable:$true] %s195_s7 }
  0x5b   : > { %p2242_p13 = scmp.lt.u32.totalorder %s2235_s10, %s2904_s3 }
  0x5c   : > { %p2238_p12 = pnand %p2236_p10, %p2583_p9 }
  0x5e   : > { %p2239_p11 = pneg %p2238_p12 }
  0x60   : > { %p2244_p1 = pnand %p2242_p13, %p2239_p11 }
  0x62   : > { %2247 = shalt.err (!%p2244_p1)
}
  0x63   : > { %s2248_s18 = scalar_lea.vmem %s196_s7, 16  ;;  %s2255_s30 = scalar_lea.vmem %s196_s7, 32 }
  0x64   : > { %p2249_p2 = scmp.ne.s32.totalorder %s196_s7, %s2248_s18  ;;  %p2256_p3 = scmp.lt.s32.totalorder %s196_s7, %s196_s7 }
  0x65   : > { %p2257_p6 = scmp.lt.s32.totalorder %s2255_s30, %s2248_s18 }
  0x66   : > { %p2251_p8 = pnand %p2249_p2, %p2583_p9 }
  0x67   : > { %p2258_p0 = por %p2257_p6, %p2256_p3 }
  0x68   : > { %p2252_p4 = pneg %p2251_p8 }
  0x6a   : > { %p2259_p7 = pnand %p2258_p0, %p2252_p4 }
  0x6c   : > { %2262 = shalt.err (!%p2259_p7)
}
  0x6d   : > { %1991 = dma.hbm_to_vmem [thread:$0]  (!%p2563_p5), %s2904_s3, 16, %s196_s7, [#allocation10]  }
  0x6e   : > { %s31_s1 = sadd.s32 1, %s2415_s23  ;;  %s34_s5 = sadd.s32 1, %s2419_s24 }
  0x6f   : > { %p32_p9 = scmp.ge.s32.totalorder %s31_s1, 3  ;;  %s206_s15 = sand.u32 1, %s2403_s20  }
  0x70   : > { %s1512_s25 = sshll.u32 %s206_s15, 8  ;;  %s1514_s26 = sshll.u32 %s2415_s23, 1 }
  0x71   : > { %s2961_s1 = smov (%p32_p9, %s31_s1), 0  ;;  %s2963_s5 = smov (!%p32_p9, %s34_s5), %s2419_s24 }
  0x72   : > { %s39_s12 = ssub.s32 %s2415_s23, %s2961_s1  ;;  %p36_p0 = scmp.ge.s32.totalorder %s2963_s5, 3 }
  0x73   : > { %s1965_s27 = smul.u32 192, %s2419_s24  ;;  %s210_s10 = scalar_lea.vmem [#allocation3], %s1512_s25 }
  0x74   : > { %s220_s7 = sshll.u32 %s210_s10, 4  ;;  %s2965_s5 = smov (%p36_p0, %s2963_s5), 0  ;;  %s2657_s7 = int_to_ptr.vmem [resolvable:$true] %s220_s7 }
  0x75   : > { %s217_s14 = sadd.s32 %s1965_s27, %s1514_s26  ;;  %s38_s28 = ssub.s32 %s2419_s24, %s2965_s5 }
  0x76   : > { %s1516_s11 = sshll.u32 %s217_s14, 6  ;;  %s40_s18 = sor.u32 %s39_s12, %s38_s28 }
  0x77   : > { %p130_p5 = scmp.eq.s32.totalorder %s38_s28, 0  ;;  %p41_p7 = scmp.eq.s32.totalorder %s40_s18, 0 }
  0x78   : > { %s2664_s4 = scalar_lea.hbm %s2901_s0, %s1516_s11  ;;  %s2937_s25 = sadd.s32 1, %s2391_s17 }
  0x79   : > { %s2669_s10 = scalar_select %p130_p5, %s2391_s17, %s2937_s25  }
  0x7a   : > { %s2938_s26 = sadd.s32 1, %s2403_s20  ;;  %s2676_s2 = scalar_lea.sflag [#allocation4], %s206_s15 }
  0x7b   : > { %s2674_s27 = scalar_select %p41_p7, %s2403_s20, %s2938_s26  }
  0x7c   : > { %s2263_s12 = scalar_lea.hbm %s2664_s4, 4096  ;;  %p2939_p12 = scmp.ne.s32.totalorder %s2933_s13, 0 }
  0x7d   : > { %p2264_p10 = scmp.ne.s32.totalorder %s2664_s4, %s2263_s12  ;;  %s2268_s11 = scalar_lea.hbm %s2901_s0, 36864 }
  0x7e   : > { %p2265_p11 = pneg %p2939_p12  ;;  %p2269_p2 = scmp.lt.u32.totalorder %s2664_s4, %s2901_s0 }
  0x7f   : > { %p2270_p8 = scmp.lt.u32.totalorder %s2268_s11, %s2263_s12  ;;  %p2272_p3 = scmp.lt.u32.totalorder %s2263_s12, %s2664_s4 }
  0x80   : > { %p2266_p13 = pnand %p2265_p11, %p2264_p10 }
  0x81   : > { %p2271_p4 = por %p2270_p8, %p2269_p2 }
  0x82   : > { %p2267_p1 = pneg %p2266_p13 }
  0x83   : > { %p2273_p6 = por %p2272_p3, %p2271_p4 }
  0x85   : > { %p2274_p9 = pnand %p2273_p6, %p2267_p1 }
  0x87   : > { %2277 = shalt.err (!%p2274_p9)
}
  0x88   : > { %s2278_s15 = scalar_lea.vmem %s2657_s7, 4096  ;;  %s2430_s8 = smov [#allocation3]  }
  0x89   : > { %p2279_p0 = scmp.ne.s32.totalorder %s2657_s7, %s2278_s15  ;;  %s2283_s25 = sshll.u32 %s2430_s8, 4  ;;  %s2284_s25 = int_to_ptr.vmem [resolvable:$false] %s2283_s25 }
  0x8a   : > { %s2285_s26 = scalar_lea.vmem %s2284_s25, 8192  ;;  %p2286_p10 = scmp.lt.s32.totalorder %s2657_s7, %s2284_s25 }
  0x8b   : > { %p2281_p5 = pnand %p2279_p0, %p2265_p11  ;;  %p2287_p13 = scmp.lt.s32.totalorder %s2285_s26, %s2278_s15 }
  0x8d   : > { %p2282_p7 = pneg %p2281_p5  ;;  %p2288_p2 = por %p2287_p13, %p2286_p10 }
  0x8f   : > { %p2289_p8 = pnand %p2288_p2, %p2282_p7 }
  0x91   : > { %2292 = shalt.err (!%p2289_p8)
}
  0x92   : > { %s2431_s12 = smov 384   ;;  %s2432_s14 = smov 128  }
  0x93   : > { %s2433_s28 = smov 8   ;;  %p2940_p11 = scmp.ne.s32.totalorder %s2931_s9, 0 }
  0x94   : > { %1995 = dma.hbm_to_vmem [thread:$0]  (!%p2939_p12), %s2664_s4, 4096, %s2657_s7, %s2676_s2, %s2431_s12, %s2432_s14, %s2433_s28  }
  0x95   : > { %232 = sbr.rel (%p2940_p11) target bundleno = 774 (0x306), region = 36  ;;  %s234_s11 = sand.u32 (!%p2940_p11), 1, %s2399_s19  }
  0x96   : > { %s1518_s18 = sshll.u32 (!%p2940_p11), %s234_s11, 8  ;;  %s235_s30 = scalar_lea.sflag (!%p2940_p11), [#allocation4], %s234_s11 }
  0x97   : > { %s2707_s15 = scalar_lea.vmem (!%p2940_p11), [#allocation3], %s1518_s18  ;;  %p2941_p1 = scmp.ne.s32.totalorder (!%p2940_p11), %s2926_s6, 0 }
  0x9c   : > { %2366 = dma.done.wait (%p2941_p1), %s235_s30, 4096  }
  0x9d   : > { %2368 = vsyncadd (%p2941_p1), %s235_s30, 4294963200  ;;  %p2942_p4 = scmp.ne.s32.totalorder %s2924_s29, 0 }
  0x9f   : > { %2370 = dma.done.wait (%p2942_p4), [#allocation7], 7168  }
  0xa0   : > { %2372 = vsyncadd (%p2942_p4), [#allocation7], 4294960128 }
  0xa1   : > { %2374 = dma.done.wait (%p2942_p4), [#allocation10], 16  }
  0xa2   : > { %2376 = vsyncadd (%p2942_p4), [#allocation10], 4294967280  ;;  %s272_s2 = sand.u32 1, %s2387_s16   ;;  %p1523_p12 = scmp.ne.s32.totalorder %s2407_s21, 0 }
  0xa3   : > { %s1522_s9 = sshll.u32 %s272_s2, 7  ;;  %v2434_v0 = vmov (!%p1523_p12), 0.0  }
  0xa4   : > { %s2724_s13 = scalar_lea.vmem [#allocation11], %s1522_s9  ;;  %282 = sbr.rel (%p1523_p12) target bundleno = 180 (0xb4), region = 56  ;;  %283 = vst [vmem:[#allocation2] sm:$0xff] (!%p1523_p12), %v2434_v0  ;;  %284 = vst [vmem:[#allocation2 + $0x8] sm:$0xff] (!%p1523_p12), %v2434_v0 }
  0xa5   : > { %285 = vst [vmem:[#allocation2 + $0x10] sm:$0xff] (!%p1523_p12), %v2434_v0  ;;  %286 = vst [vmem:[#allocation2 + $0x18] sm:$0xff] (!%p1523_p12), %v2434_v0 }
  0xa6   : > { %287 = vst [vmem:[#allocation2 + $0x20] sm:$0xff] (!%p1523_p12), %v2434_v0  ;;  %288 = vst [vmem:[#allocation2 + $0x28] sm:$0xff] (!%p1523_p12), %v2434_v0 }
  0xa7   : > { %289 = vst [vmem:[#allocation2 + $0x30] sm:$0xff] (!%p1523_p12), %v2434_v0  ;;  %290 = vst [vmem:[#allocation2 + $0x38] sm:$0xff] (!%p1523_p12), %v2434_v0 }
  0xa8   : > { %291 = vst [vmem:[#allocation2 + $0x40] sm:$0xff] (!%p1523_p12), %v2434_v0  ;;  %292 = vst [vmem:[#allocation2 + $0x48] sm:$0xff] (!%p1523_p12), %v2434_v0 }
  0xa9   : > { %293 = vst [vmem:[#allocation2 + $0x50] sm:$0xff] (!%p1523_p12), %v2434_v0  ;;  %294 = vst [vmem:[#allocation2 + $0x58] sm:$0xff] (!%p1523_p12), %v2434_v0 }
  0xaa   : > { %295 = vst [vmem:[#allocation2 + $0x60] sm:$0xff] (!%p1523_p12), %v2434_v0  ;;  %296 = vst [vmem:[#allocation2 + $0x68] sm:$0xff] (!%p1523_p12), %v2434_v0 }
  0xab   : > { %297 = vst [vmem:[#allocation2 + $0x70] sm:$0xff] %v2434_v0  ;;  %298 = vst [vmem:[#allocation2 + $0x78] sm:$0xff] %v2434_v0 }
  0xac   : > { %299 = vst [vmem:[#allocation2 + $0x80] sm:$0xff] %v2434_v0  ;;  %300 = vst [vmem:[#allocation2 + $0x88] sm:$0xff] %v2434_v0 }
  0xad   : > { %301 = vst [vmem:[#allocation2 + $0x90] sm:$0xff] %v2434_v0  ;;  %302 = vst [vmem:[#allocation2 + $0x98] sm:$0xff] %v2434_v0 }
  0xae   : > { %303 = vst [vmem:[#allocation2 + $0xa0] sm:$0xff] %v2434_v0  ;;  %304 = vst [vmem:[#allocation2 + $0xa8] sm:$0xff] %v2434_v0 }
  0xaf   : > { %305 = vst [vmem:[#allocation2 + $0xb0] sm:$0xff] %v2434_v0  ;;  %306 = vst [vmem:[#allocation2 + $0xb8] sm:$0xff] %v2434_v0 }
  0xb0   : > { %307 = vst [vmem:[#allocation2 + $0xc0] sm:$0xff] %v2434_v0  ;;  %308 = vst [vmem:[#allocation2 + $0xc8] sm:$0xff] %v2434_v0 }
  0xb1   : > { %309 = vst [vmem:[#allocation2 + $0xd0] sm:$0xff] %v2434_v0  ;;  %310 = vst [vmem:[#allocation2 + $0xd8] sm:$0xff] %v2434_v0 }
  0xb2   : > { %311 = vst [vmem:[#allocation2 + $0xe0] sm:$0xff] %v2434_v0  ;;  %312 = vst [vmem:[#allocation2 + $0xe8] sm:$0xff] %v2434_v0 }
  0xb3   : > { %313 = vst [vmem:[#allocation2 + $0xf0] sm:$0xff] %v2434_v0  ;;  %314 = vst [vmem:[#allocation2 + $0xf8] sm:$0xff] %v2434_v0 }
  0xb4 PF: > { %s1524_s29 = sshll.u32 %s2407_s21, 8  ;;  %v2125_v1 = vld [vmem:[%s2707_s15 + $0x4] ss:$8 sps:$4 sm:$0xff]   ;;  %v2123_v19 = vld [vmem:[%s2707_s15] ss:$8 sps:$4 sm:$0xff]   ;;  %p1574_p3 = scmp.ne.s32.totalorder %s2407_s21, 2 }
  0xb5   : > { %s316_s6 = sshra.s32 %s1524_s29, 3  ;;  %v2128_v2 = vld [vmem:[%s2707_s15 + $0x84] ss:$8 sps:$4 sm:$0xff]   ;;  %704 = vmatprep.mubr.bf16.mxu0 %v2125_v1  ;;  %v2126_v20 = vld [vmem:[%s2707_s15 + $0x80] ss:$8 sps:$4 sm:$0xff]  }
  0xb6   : > { %s1525_s7 = sshll.u32 %s316_s6, 2  ;;  %768 = vmatprep.mubr.bf16.mxu1 %v2128_v2  ;;  %v2129_v21 = vld [vmem:[%s2707_s15 + $0x14] ss:$8 sps:$4 sm:$0xff]   ;;  %v2133_v23 = vld [vmem:[%s2707_s15 + $0x10] ss:$8 sps:$4 sm:$0xff]   ;;  %v352_v51 = vld [vmem:[#allocation2] sm:$0xff] }
  0xb7   : > { %s2730_s4 = scalar_lea.vmem [#allocation6], %s1525_s7  ;;  %v2131_v22 = vld [vmem:[%s2707_s15 + $0x94] ss:$8 sps:$4 sm:$0xff]   ;;  %v2134_v24 = vld [vmem:[%s2707_s15 + $0x90] ss:$8 sps:$4 sm:$0xff]   ;;  %v368_v53 = vld [vmem:[#allocation2 + $0x80] sm:$0xff] }
  0xb8   : > { %v2107_v3 = vld [vmem:[%s2730_s4 + $0x40] sm:$0xff]   ;;  %v2109_v5 = vld [vmem:[%s2730_s4 + $0x48] sm:$0xff]   ;;  %v2111_v7 = vld [vmem:[%s2730_s4 + $0x50] sm:$0xff]  }
  0xb9   : > { %v2108_v4 = vld [vmem:[%s2730_s4] sm:$0xff]   ;;  %1749 = vmatprep.subr.bf16.mxu0 %v2107_v3  ;;  %1933 = vmatprep.subr.bf16.mxu1 %v2107_v3  ;;  %v2110_v6 = vld [vmem:[%s2730_s4 + $0x8] sm:$0xff]   ;;  %v2112_v8 = vld [vmem:[%s2730_s4 + $0x10] sm:$0xff]  }
  0xba   : > { %1750 = vmatpush3.bf16.msra.mxu0 %v2108_v4  ;;  %1941 = vmatpush3.bf16.msra.mxu1 %v2108_v4  ;;  %v2113_v9 = vld [vmem:[%s2730_s4 + $0x58] sm:$0xff]   ;;  %v2115_v11 = vld [vmem:[%s2730_s4 + $0x60] sm:$0xff]   ;;  %v2117_v13 = vld [vmem:[%s2730_s4 + $0x68] sm:$0xff]  }
  0xbb   : > { %1751 = vmatprep.subr.bf16.mxu0 %v2109_v5  ;;  %1934 = vmatprep.subr.bf16.mxu1 %v2109_v5  ;;  %v2114_v10 = vld [vmem:[%s2730_s4 + $0x18] sm:$0xff]   ;;  %v2116_v12 = vld [vmem:[%s2730_s4 + $0x20] sm:$0xff]   ;;  %v2118_v14 = vld [vmem:[%s2730_s4 + $0x28] sm:$0xff]  }
  0xbc   : > { %v2119_v15 = vld [vmem:[%s2730_s4 + $0x70] sm:$0xff]   ;;  %v2121_v17 = vld [vmem:[%s2730_s4 + $0x78] sm:$0xff]   ;;  %v2135_v25 = vld [vmem:[%s2707_s15 + $0x24] ss:$8 sps:$4 sm:$0xff]  }
  0xbd   : > { %v2120_v16 = vld [vmem:[%s2730_s4 + $0x30] sm:$0xff]   ;;  %v2122_v18 = vld [vmem:[%s2730_s4 + $0x38] sm:$0xff]   ;;  %v2137_v26 = vld [vmem:[%s2707_s15 + $0xa4] ss:$8 sps:$4 sm:$0xff]  }
  0xbe   : > { %1752 = vmatpush3.bf16.msra.mxu0 %v2110_v6  ;;  %1942 = vmatpush3.bf16.msra.mxu1 %v2110_v6  ;;  %v2139_v27 = vld [vmem:[%s2707_s15 + $0x20] ss:$8 sps:$4 sm:$0xff]   ;;  %v2141_v29 = vld [vmem:[%s2707_s15 + $0x34] ss:$8 sps:$4 sm:$0xff]   ;;  %v2145_v31 = vld [vmem:[%s2707_s15 + $0x30] ss:$8 sps:$4 sm:$0xff]  }
  0xbf   : > { %1753 = vmatprep.subr.bf16.mxu0 %v2111_v7  ;;  %1935 = vmatprep.subr.bf16.mxu1 %v2111_v7  ;;  %v2140_v28 = vld [vmem:[%s2707_s15 + $0xa0] ss:$8 sps:$4 sm:$0xff]   ;;  %v2143_v30 = vld [vmem:[%s2707_s15 + $0xb4] ss:$8 sps:$4 sm:$0xff]   ;;  %v2146_v32 = vld [vmem:[%s2707_s15 + $0xb0] ss:$8 sps:$4 sm:$0xff]  }
  0xc0   : > { %v2147_v33 = vld [vmem:[%s2707_s15 + $0x44] ss:$8 sps:$4 sm:$0xff]   ;;  %v2151_v35 = vld [vmem:[%s2707_s15 + $0x40] ss:$8 sps:$4 sm:$0xff]   ;;  %v2153_v37 = vld [vmem:[%s2707_s15 + $0x54] ss:$8 sps:$4 sm:$0xff]  }
  0xc1   : > { %v2149_v34 = vld [vmem:[%s2707_s15 + $0xc4] ss:$8 sps:$4 sm:$0xff]   ;;  %v2152_v36 = vld [vmem:[%s2707_s15 + $0xc0] ss:$8 sps:$4 sm:$0xff]   ;;  %v2155_v38 = vld [vmem:[%s2707_s15 + $0xd4] ss:$8 sps:$4 sm:$0xff]  }
  0xc2   : > { %1754 = vmatpush3.bf16.msra.mxu0 %v2112_v8  ;;  %1943 = vmatpush3.bf16.msra.mxu1 %v2112_v8  ;;  %v2157_v39 = vld [vmem:[%s2707_s15 + $0x50] ss:$8 sps:$4 sm:$0xff]   ;;  %v2159_v41 = vld [vmem:[%s2707_s15 + $0x64] ss:$8 sps:$4 sm:$0xff]   ;;  %v2163_v43 = vld [vmem:[%s2707_s15 + $0x60] ss:$8 sps:$4 sm:$0xff]  }
  0xc3   : > { %1755 = vmatprep.subr.bf16.mxu0 %v2113_v9  ;;  %1936 = vmatprep.subr.bf16.mxu1 %v2113_v9  ;;  %v2158_v40 = vld [vmem:[%s2707_s15 + $0xd0] ss:$8 sps:$4 sm:$0xff]   ;;  %v2161_v42 = vld [vmem:[%s2707_s15 + $0xe4] ss:$8 sps:$4 sm:$0xff]   ;;  %v2164_v44 = vld [vmem:[%s2707_s15 + $0xe0] ss:$8 sps:$4 sm:$0xff]  }
  0xc4   : > { %v2165_v45 = vld [vmem:[%s2707_s15 + $0x74] ss:$8 sps:$4 sm:$0xff]   ;;  %v2169_v47 = vld [vmem:[%s2707_s15 + $0x70] ss:$8 sps:$4 sm:$0xff]   ;;  %v353_v59 = vld [vmem:[#allocation2 + $0x8] sm:$0xff] }
  0xc5   : > { %v2167_v46 = vld [vmem:[%s2707_s15 + $0xf4] ss:$8 sps:$4 sm:$0xff]   ;;  %v2170_v48 = vld [vmem:[%s2707_s15 + $0xf0] ss:$8 sps:$4 sm:$0xff]   ;;  %v369_v61 = vld [vmem:[#allocation2 + $0x88] sm:$0xff] }
  0xc6   : > { %1756 = vmatpush3.bf16.msra.mxu0 %v2114_v10  ;;  %1944 = vmatpush3.bf16.msra.mxu1 %v2114_v10  ;;  %v354_v7 = vld [vmem:[#allocation2 + $0x10] sm:$0xff] }
  0xc7   : > { %1757 = vmatprep.subr.bf16.mxu0 %v2115_v11  ;;  %1937 = vmatprep.subr.bf16.mxu1 %v2115_v11  ;;  %v370_v9 = vld [vmem:[#allocation2 + $0x90] sm:$0xff] }
  0xca   : > { %1758 = vmatpush3.bf16.msra.mxu0 %v2116_v12  ;;  %1945 = vmatpush3.bf16.msra.mxu1 %v2116_v12 }
  0xcb   : > { %1759 = vmatprep.subr.bf16.mxu0 %v2117_v13  ;;  %1938 = vmatprep.subr.bf16.mxu1 %v2117_v13 }
  0xce   : > { %1760 = vmatpush3.bf16.msra.mxu0 %v2118_v14  ;;  %1946 = vmatpush3.bf16.msra.mxu1 %v2118_v14 }
  0xcf   : > { %1761 = vmatprep.subr.bf16.mxu0 %v2119_v15  ;;  %1939 = vmatprep.subr.bf16.mxu1 %v2119_v15  ;;  %v355_v15 = vld [vmem:[#allocation2 + $0x18] sm:$0xff] }
  0xd2   : > { %1762 = vmatpush3.bf16.msra.mxu0 %v2120_v16  ;;  %1947 = vmatpush3.bf16.msra.mxu1 %v2120_v16 }
  0xd3   : > { %1763 = vmatprep.subr.bf16.mxu0 %v2121_v17  ;;  %1940 = vmatprep.subr.bf16.mxu1 %v2121_v17  ;;  %v371_v17 = vld [vmem:[#allocation2 + $0x98] sm:$0xff] }
  0xd6   : > { %1764 = vmatpush3.bf16.msra.mxu0 %v2122_v18  ;;  %1948 = vmatpush3.bf16.msra.mxu1 %v2122_v18 }
  0xd9   : > { %705 = vmatmul.mubr.bf16.vlgmr.msra.gmra.mrb[0].mxu0 %v2123_v19  ;;  %769 = vmatmul.mubr.bf16.vlgmr.msra.gmra.mrb[0].mxu1 %v2126_v20 }
  0xda   : > { %712 = vmatprep.mubr.bf16.mxu0 %v2129_v21  ;;  %776 = vmatprep.mubr.bf16.mxu1 %v2131_v22 }
  0xe1   : > { %713 = vmatmul.mubr.bf16.gmra.mrb[4].mxu0 %v2133_v23  ;;  %777 = vmatmul.mubr.bf16.gmra.mrb[4].mxu1 %v2134_v24 }
  0xe2   : > { %720 = vmatprep.mubr.bf16.mxu0 %v2135_v25  ;;  %784 = vmatprep.mubr.bf16.mxu1 %v2137_v26 }
  0xe9   : > { %721 = vmatmul.mubr.bf16.gmra.mrb[8].mxu0 %v2139_v27  ;;  %785 = vmatmul.mubr.bf16.gmra.mrb[8].mxu1 %v2140_v28  ;;  %v356_v27 = vld [vmem:[#allocation2 + $0x20] sm:$0xff] }
  0xea   : > { %728 = vmatprep.mubr.bf16.mxu0 %v2141_v29  ;;  %792 = vmatprep.mubr.bf16.mxu1 %v2143_v30  ;;  %v372_v29 = vld [vmem:[#allocation2 + $0xa0] sm:$0xff] }
  0xf1   : > { %729 = vmatmul.mubr.bf16.gmra.mrb[12].mxu0 %v2145_v31  ;;  %793 = vmatmul.mubr.bf16.gmra.mrb[12].mxu1 %v2146_v32 }
  0xf2   : > { %736 = vmatprep.mubr.bf16.mxu0 %v2147_v33  ;;  %800 = vmatprep.mubr.bf16.mxu1 %v2149_v34 }
  0xf9   : > { %737 = vmatmul.mubr.bf16.gmra.mrb[16].mxu0 %v2151_v35  ;;  %801 = vmatmul.mubr.bf16.gmra.mrb[16].mxu1 %v2152_v36  ;;  %v357_v35 = vld [vmem:[#allocation2 + $0x28] sm:$0xff] }
  0xfa   : > { %744 = vmatprep.mubr.bf16.mxu0 %v2153_v37  ;;  %808 = vmatprep.mubr.bf16.mxu1 %v2155_v38  ;;  %v373_v37 = vld [vmem:[#allocation2 + $0xa8] sm:$0xff] }
 0x101   : > { %745 = vmatmul.mubr.bf16.gmra.mrb[20].mxu0 %v2157_v39  ;;  %809 = vmatmul.mubr.bf16.gmra.mrb[20].mxu1 %v2158_v40 }
 0x102   : > { %752 = vmatprep.mubr.bf16.mxu0 %v2159_v41  ;;  %816 = vmatprep.mubr.bf16.mxu1 %v2161_v42 }
 0x109   : > { %753 = vmatmul.mubr.bf16.gmra.mrb[24].mxu0 %v2163_v43  ;;  %817 = vmatmul.mubr.bf16.gmra.mrb[24].mxu1 %v2164_v44 }
 0x10a   : > { %760 = vmatprep.mubr.bf16.mxu0 %v2165_v45  ;;  %824 = vmatprep.mubr.bf16.mxu1 %v2167_v46 }
 0x111   : > { %761 = vmatmul.mubr.bf16.gmra.mrb[28].mxu0 %v2169_v47  ;;  %825 = vmatmul.mubr.bf16.gmra.mrb[28].mxu1 %v2170_v48  ;;  %v358_v47 = vld [vmem:[#allocation2 + $0x30] sm:$0xff] }
 0x1ac   : > { %v1765_v49 = vpop.f32.mrb[0].mxu0  ;;  %v1813_v50 = vpop.f32.mrb[0].mxu1 }
 0x1ad   : > { %v1766_v52 = vpop.f32.mrb[1].mxu0  ;;  %v1814_v54 = vpop.f32.mrb[1].mxu1 }
 0x1ae   : > { %v1767_v55 = vadd.f32 %v1766_v52, %v1765_v49  ;;  %v1815_v56 = vadd.f32 %v1814_v54, %v1813_v50  ;;  %v1768_v57 = vpop.f32.mrb[2].mxu0  ;;  %v1816_v58 = vpop.f32.mrb[2].mxu1  ;;  %v374_v49 = vld [vmem:[#allocation2 + $0xb0] sm:$0xff] }
 0x1af   : > { %v1769_v60 = vpop.f32.mrb[3].mxu0  ;;  %v1817_v62 = vpop.f32.mrb[3].mxu1 }
 0x1b0   : > { %v833_v63 = vadd.f32 %v1767_v55, %v352_v51  ;;  %v849_v0 = vadd.f32 %v1815_v56, %v368_v53  ;;  %v1770_v1 = vadd.f32 %v1769_v60, %v1768_v57  ;;  %v1818_v2 = vadd.f32 %v1817_v62, %v1816_v58  ;;  %v359_v55 = vld [vmem:[#allocation2 + $0x38] sm:$0xff] }
 0x1b1   : > { %v375_v57 = vld [vmem:[#allocation2 + $0xb8] sm:$0xff] }
 0x1b2   : > { %865 = vst [vmem:[#allocation2] sm:$0xff] %v833_v63  ;;  %881 = vst [vmem:[#allocation2 + $0x80] sm:$0xff] %v849_v0  ;;  %v834_v3 = vadd.f32 %v1770_v1, %v353_v59  ;;  %v850_v4 = vadd.f32 %v1818_v2, %v369_v61 }
 0x1b4   : > { %866 = vst [vmem:[#allocation2 + $0x8] sm:$0xff] %v834_v3  ;;  %882 = vst [vmem:[#allocation2 + $0x88] sm:$0xff] %v850_v4  ;;  %v1771_v5 = vpop.f32.mrb[4].mxu0  ;;  %v1819_v6 = vpop.f32.mrb[4].mxu1  ;;  %v360_v3 = vld [vmem:[#allocation2 + $0x40] sm:$0xff] }
 0x1b5   : > { %v1772_v8 = vpop.f32.mrb[5].mxu0  ;;  %v1820_v10 = vpop.f32.mrb[5].mxu1 }
 0x1b6   : > { %v1773_v11 = vadd.f32 %v1772_v8, %v1771_v5  ;;  %v1821_v12 = vadd.f32 %v1820_v10, %v1819_v6  ;;  %v1774_v13 = vpop.f32.mrb[6].mxu0  ;;  %v1822_v14 = vpop.f32.mrb[6].mxu1  ;;  %v376_v5 = vld [vmem:[#allocation2 + $0xc0] sm:$0xff] }
 0x1b7   : > { %v1775_v16 = vpop.f32.mrb[7].mxu0  ;;  %v1823_v18 = vpop.f32.mrb[7].mxu1 }
 0x1b8   : > { %v835_v19 = vadd.f32 %v1773_v11, %v354_v7  ;;  %v851_v20 = vadd.f32 %v1821_v12, %v370_v9  ;;  %v1776_v21 = vadd.f32 %v1775_v16, %v1774_v13  ;;  %v1824_v22 = vadd.f32 %v1823_v18, %v1822_v14  ;;  %v361_v11 = vld [vmem:[#allocation2 + $0x48] sm:$0xff] }
 0x1b9   : > { %v377_v13 = vld [vmem:[#allocation2 + $0xc8] sm:$0xff] }
 0x1ba   : > { %867 = vst [vmem:[#allocation2 + $0x10] sm:$0xff] %v835_v19  ;;  %883 = vst [vmem:[#allocation2 + $0x90] sm:$0xff] %v851_v20  ;;  %v836_v23 = vadd.f32 %v1776_v21, %v355_v15  ;;  %v852_v24 = vadd.f32 %v1824_v22, %v371_v17 }
 0x1bc   : > { %868 = vst [vmem:[#allocation2 + $0x18] sm:$0xff] %v836_v23  ;;  %884 = vst [vmem:[#allocation2 + $0x98] sm:$0xff] %v852_v24  ;;  %v1777_v25 = vpop.f32.mrb[8].mxu0  ;;  %v1825_v26 = vpop.f32.mrb[8].mxu1  ;;  %v362_v23 = vld [vmem:[#allocation2 + $0x50] sm:$0xff] }
 0x1bd   : > { %v1778_v28 = vpop.f32.mrb[9].mxu0  ;;  %v1826_v30 = vpop.f32.mrb[9].mxu1 }
 0x1be   : > { %v1779_v31 = vadd.f32 %v1778_v28, %v1777_v25  ;;  %v1827_v32 = vadd.f32 %v1826_v30, %v1825_v26  ;;  %v1780_v33 = vpop.f32.mrb[10].mxu0  ;;  %v1828_v34 = vpop.f32.mrb[10].mxu1  ;;  %v378_v25 = vld [vmem:[#allocation2 + $0xd0] sm:$0xff] }
 0x1bf   : > { %v1781_v36 = vpop.f32.mrb[11].mxu0  ;;  %v1829_v38 = vpop.f32.mrb[11].mxu1 }
 0x1c0   : > { %v837_v39 = vadd.f32 %v1779_v31, %v356_v27  ;;  %v853_v40 = vadd.f32 %v1827_v32, %v372_v29  ;;  %v1782_v41 = vadd.f32 %v1781_v36, %v1780_v33  ;;  %v1830_v42 = vadd.f32 %v1829_v38, %v1828_v34  ;;  %v363_v31 = vld [vmem:[#allocation2 + $0x58] sm:$0xff] }
 0x1c1   : > { %v379_v33 = vld [vmem:[#allocation2 + $0xd8] sm:$0xff] }
 0x1c2   : > { %869 = vst [vmem:[#allocation2 + $0x20] sm:$0xff] %v837_v39  ;;  %885 = vst [vmem:[#allocation2 + $0xa0] sm:$0xff] %v853_v40  ;;  %v838_v43 = vadd.f32 %v1782_v41, %v357_v35  ;;  %v854_v44 = vadd.f32 %v1830_v42, %v373_v37 }
 0x1c4   : > { %870 = vst [vmem:[#allocation2 + $0x28] sm:$0xff] %v838_v43  ;;  %886 = vst [vmem:[#allocation2 + $0xa8] sm:$0xff] %v854_v44  ;;  %v1783_v45 = vpop.f32.mrb[12].mxu0  ;;  %v1831_v46 = vpop.f32.mrb[12].mxu1  ;;  %v364_v43 = vld [vmem:[#allocation2 + $0x60] sm:$0xff] }
 0x1c5   : > { %v1784_v48 = vpop.f32.mrb[13].mxu0  ;;  %v1832_v50 = vpop.f32.mrb[13].mxu1 }
 0x1c6   : > { %v1785_v51 = vadd.f32 %v1784_v48, %v1783_v45  ;;  %v1833_v52 = vadd.f32 %v1832_v50, %v1831_v46  ;;  %v1786_v53 = vpop.f32.mrb[14].mxu0  ;;  %v1834_v54 = vpop.f32.mrb[14].mxu1  ;;  %v380_v45 = vld [vmem:[#allocation2 + $0xe0] sm:$0xff] }
 0x1c7   : > { %v1787_v56 = vpop.f32.mrb[15].mxu0  ;;  %v1835_v58 = vpop.f32.mrb[15].mxu1 }
 0x1c8   : > { %v839_v59 = vadd.f32 %v1785_v51, %v358_v47  ;;  %v855_v60 = vadd.f32 %v1833_v52, %v374_v49  ;;  %v1788_v61 = vadd.f32 %v1787_v56, %v1786_v53  ;;  %v1836_v62 = vadd.f32 %v1835_v58, %v1834_v54  ;;  %v365_v51 = vld [vmem:[#allocation2 + $0x68] sm:$0xff] }
 0x1c9   : > { %v381_v53 = vld [vmem:[#allocation2 + $0xe8] sm:$0xff] }
 0x1ca   : > { %871 = vst [vmem:[#allocation2 + $0x30] sm:$0xff] %v839_v59  ;;  %887 = vst [vmem:[#allocation2 + $0xb0] sm:$0xff] %v855_v60  ;;  %v840_v63 = vadd.f32 %v1788_v61, %v359_v55  ;;  %v856_v0 = vadd.f32 %v1836_v62, %v375_v57 }
 0x1cc   : > { %872 = vst [vmem:[#allocation2 + $0x38] sm:$0xff] %v840_v63  ;;  %888 = vst [vmem:[#allocation2 + $0xb8] sm:$0xff] %v856_v0  ;;  %v1789_v1 = vpop.f32.mrb[16].mxu0  ;;  %v1837_v2 = vpop.f32.mrb[16].mxu1  ;;  %v366_v63 = vld [vmem:[#allocation2 + $0x70] sm:$0xff] }
 0x1cd   : > { %v1790_v4 = vpop.f32.mrb[17].mxu0  ;;  %v1838_v6 = vpop.f32.mrb[17].mxu1 }
 0x1ce   : > { %v1791_v7 = vadd.f32 %v1790_v4, %v1789_v1  ;;  %v1839_v8 = vadd.f32 %v1838_v6, %v1837_v2  ;;  %v1792_v9 = vpop.f32.mrb[18].mxu0  ;;  %v1840_v10 = vpop.f32.mrb[18].mxu1  ;;  %v382_v1 = vld [vmem:[#allocation2 + $0xf0] sm:$0xff] }
 0x1cf   : > { %v1793_v12 = vpop.f32.mrb[19].mxu0  ;;  %v1841_v14 = vpop.f32.mrb[19].mxu1 }
 0x1d0   : > { %v841_v15 = vadd.f32 %v1791_v7, %v360_v3  ;;  %v857_v16 = vadd.f32 %v1839_v8, %v376_v5  ;;  %v1794_v17 = vadd.f32 %v1793_v12, %v1792_v9  ;;  %v1842_v18 = vadd.f32 %v1841_v14, %v1840_v10  ;;  %v367_v7 = vld [vmem:[#allocation2 + $0x78] sm:$0xff] }
 0x1d1   : > { %v383_v9 = vld [vmem:[#allocation2 + $0xf8] sm:$0xff] }
 0x1d2   : > { %873 = vst [vmem:[#allocation2 + $0x40] sm:$0xff] %v841_v15  ;;  %889 = vst [vmem:[#allocation2 + $0xc0] sm:$0xff] %v857_v16  ;;  %v842_v19 = vadd.f32 %v1794_v17, %v361_v11  ;;  %v858_v20 = vadd.f32 %v1842_v18, %v377_v13  ;;  %v2171_v17 = vld [vmem:[#allocation8] sm:$0xff] (!%p1574_p3)   ;;  %v2172_v18 = vld [vmem:[#allocation8 + $0x8] sm:$0xff] (!%p1574_p3)  }
 0x1d3   : > { %1885 = vmatprep.subr.bf16.mxu0 (!%p1574_p3), %v2171_v17  ;;  %1949 = vmatprep.subr.bf16.mxu1 (!%p1574_p3), %v2171_v17 }
 0x1d4   : > { %874 = vst [vmem:[#allocation2 + $0x48] sm:$0xff] %v842_v19  ;;  %890 = vst [vmem:[#allocation2 + $0xc8] sm:$0xff] %v858_v20  ;;  %v1795_v21 = vpop.f32.mrb[20].mxu0  ;;  %v1843_v22 = vpop.f32.mrb[20].mxu1  ;;  %1886 = vmatpush3.bf16.msra.mxu0 (!%p1574_p3), %v2171_v17  ;;  %1957 = vmatpush3.bf16.msra.mxu1 (!%p1574_p3), %v2171_v17  ;;  %v2173_v19 = vld [vmem:[#allocation8 + $0x10] sm:$0xff] (!%p1574_p3)   ;;  %v2174_v20 = vld [vmem:[#allocation8 + $0x18] sm:$0xff] (!%p1574_p3)  }
 0x1d5   : > { %v1796_v24 = vpop.f32.mrb[21].mxu0  ;;  %v1844_v26 = vpop.f32.mrb[21].mxu1  ;;  %1887 = vmatprep.subr.bf16.mxu0 (!%p1574_p3), %v2172_v18  ;;  %1950 = vmatprep.subr.bf16.mxu1 (!%p1574_p3), %v2172_v18 }
 0x1d6   : > { %v1797_v27 = vadd.f32 %v1796_v24, %v1795_v21  ;;  %v1845_v28 = vadd.f32 %v1844_v26, %v1843_v22  ;;  %v1798_v29 = vpop.f32.mrb[22].mxu0  ;;  %v1846_v30 = vpop.f32.mrb[22].mxu1  ;;  %v901_v21 = vld [vmem:[#allocation2] sm:$0xff] (!%p1574_p3)  ;;  %v902_v22 = vld [vmem:[#allocation2 + $0x8] sm:$0xff] (!%p1574_p3) }
 0x1d7   : > { %v1799_v32 = vpop.f32.mrb[23].mxu0  ;;  %v1847_v34 = vpop.f32.mrb[23].mxu1  ;;  %v933_v24 = vpack.c.bf16 (!%p1574_p3), %v902_v22, %v901_v21 }
 0x1d8   : > { %v843_v35 = vadd.f32 %v1797_v27, %v362_v23  ;;  %v859_v36 = vadd.f32 %v1845_v28, %v378_v25  ;;  %v1800_v37 = vadd.f32 %v1799_v32, %v1798_v29  ;;  %v1848_v38 = vadd.f32 %v1847_v34, %v1846_v30  ;;  %1888 = vmatpush3.bf16.msra.mxu0 (!%p1574_p3), %v2172_v18  ;;  %v917_v23 = vld [vmem:[#allocation2 + $0x80] sm:$0xff] (!%p1574_p3)  ;;  %v918_v25 = vld [vmem:[#allocation2 + $0x88] sm:$0xff] (!%p1574_p3)  ;;  %v2177_v29 = vld [vmem:[#allocation8 + $0x30] sm:$0xff] (!%p1574_p3)  }
 0x1d9   : > { %1958 = vmatpush3.bf16.msra.mxu1 (!%p1574_p3), %v2172_v18  ;;  %1889 = vmatprep.subr.bf16.mxu0 (!%p1574_p3), %v2173_v19  ;;  %v941_v26 = vpack.c.bf16 (!%p1574_p3), %v918_v25, %v917_v23  ;;  %v2175_v27 = vld [vmem:[#allocation8 + $0x20] sm:$0xff] (!%p1574_p3)   ;;  %v2176_v28 = vld [vmem:[#allocation8 + $0x28] sm:$0xff] (!%p1574_p3)   ;;  %v2178_v30 = vld [vmem:[#allocation8 + $0x38] sm:$0xff] (!%p1574_p3)  }
 0x1da   : > { %875 = vst [vmem:[#allocation2 + $0x50] sm:$0xff] %v843_v35  ;;  %891 = vst [vmem:[#allocation2 + $0xd0] sm:$0xff] %v859_v36  ;;  %v844_v39 = vadd.f32 %v1800_v37, %v363_v31  ;;  %v860_v40 = vadd.f32 %v1848_v38, %v379_v33  ;;  %1951 = vmatprep.subr.bf16.mxu1 (!%p1574_p3), %v2173_v19  ;;  %1901 = vmatprep.mubr.bf16.mxu0 (!%p1574_p3), %v933_v24  ;;  %v903_v31 = vld [vmem:[#allocation2 + $0x10] sm:$0xff] (!%p1574_p3)  ;;  %v904_v32 = vld [vmem:[#allocation2 + $0x18] sm:$0xff] (!%p1574_p3) }
 0x1db   : > { %1917 = vmatprep.mubr.bf16.mxu1 (!%p1574_p3), %v941_v26  ;;  %v919_v33 = vld [vmem:[#allocation2 + $0x90] sm:$0xff] (!%p1574_p3)  ;;  %v920_v34 = vld [vmem:[#allocation2 + $0x98] sm:$0xff] (!%p1574_p3)  ;;  %v905_v35 = vld [vmem:[#allocation2 + $0x20] sm:$0xff] (!%p1574_p3) }
 0x1dc   : > { %876 = vst [vmem:[#allocation2 + $0x58] sm:$0xff] %v844_v39  ;;  %892 = vst [vmem:[#allocation2 + $0xd8] sm:$0xff] %v860_v40  ;;  %v1801_v41 = vpop.f32.mrb[24].mxu0  ;;  %v1849_v42 = vpop.f32.mrb[24].mxu1  ;;  %1890 = vmatpush3.bf16.msra.mxu0 (!%p1574_p3), %v2173_v19  ;;  %v906_v36 = vld [vmem:[#allocation2 + $0x28] sm:$0xff] (!%p1574_p3)  ;;  %v921_v37 = vld [vmem:[#allocation2 + $0xa0] sm:$0xff] (!%p1574_p3)  ;;  %v934_v39 = vpack.c.bf16 (!%p1574_p3), %v904_v32, %v903_v31  ;;  %v942_v40 = vpack.c.bf16 (!%p1574_p3), %v920_v34, %v919_v33 }
 0x1dd   : > { %v1802_v44 = vpop.f32.mrb[25].mxu0  ;;  %v1850_v46 = vpop.f32.mrb[25].mxu1  ;;  %1959 = vmatpush3.bf16.msra.mxu1 (!%p1574_p3), %v2173_v19  ;;  %1891 = vmatprep.subr.bf16.mxu0 (!%p1574_p3), %v2174_v20  ;;  %v922_v38 = vld [vmem:[#allocation2 + $0xa8] sm:$0xff] (!%p1574_p3) }
 0x1de   : > { %v1803_v47 = vadd.f32 %v1802_v44, %v1801_v41  ;;  %v1851_v48 = vadd.f32 %v1850_v46, %v1849_v42  ;;  %v1804_v49 = vpop.f32.mrb[26].mxu0  ;;  %v1852_v50 = vpop.f32.mrb[26].mxu1  ;;  %1952 = vmatprep.subr.bf16.mxu1 (!%p1574_p3), %v2174_v20  ;;  %v935_v41 = vpack.c.bf16 (!%p1574_p3), %v906_v36, %v905_v35  ;;  %v943_v42 = vpack.c.bf16 (!%p1574_p3), %v922_v38, %v921_v37  ;;  %v908_v44 = vld [vmem:[#allocation2 + $0x38] sm:$0xff] (!%p1574_p3) }
 0x1df   : > { %v1805_v52 = vpop.f32.mrb[27].mxu0  ;;  %v1853_v54 = vpop.f32.mrb[27].mxu1  ;;  %v924_v46 = vld [vmem:[#allocation2 + $0xb8] sm:$0xff] (!%p1574_p3) }
 0x1e0   : > { %v845_v55 = vadd.f32 %v1803_v47, %v364_v43  ;;  %v861_v56 = vadd.f32 %v1851_v48, %v380_v45  ;;  %v1806_v57 = vadd.f32 %v1805_v52, %v1804_v49  ;;  %v1854_v58 = vadd.f32 %v1853_v54, %v1852_v50  ;;  %1892 = vmatpush3.bf16.msra.mxu0 (!%p1574_p3), %v2174_v20  ;;  %v907_v43 = vld [vmem:[#allocation2 + $0x30] sm:$0xff] (!%p1574_p3)  ;;  %v909_v47 = vld [vmem:[#allocation2 + $0x40] sm:$0xff] (!%p1574_p3)  ;;  %v910_v48 = vld [vmem:[#allocation2 + $0x48] sm:$0xff] (!%p1574_p3) }
 0x1e1   : > { %1960 = vmatpush3.bf16.msra.mxu1 (!%p1574_p3), %v2174_v20  ;;  %1893 = vmatprep.subr.bf16.mxu0 (!%p1574_p3), %v2175_v27  ;;  %v923_v45 = vld [vmem:[#allocation2 + $0xb0] sm:$0xff] (!%p1574_p3)  ;;  %v925_v49 = vld [vmem:[#allocation2 + $0xc0] sm:$0xff] (!%p1574_p3)  ;;  %v926_v50 = vld [vmem:[#allocation2 + $0xc8] sm:$0xff] (!%p1574_p3) }
 0x1e2   : > { %877 = vst [vmem:[#allocation2 + $0x60] sm:$0xff] %v845_v55  ;;  %893 = vst [vmem:[#allocation2 + $0xe0] sm:$0xff] %v861_v56  ;;  %v846_v59 = vadd.f32 %v1806_v57, %v365_v51  ;;  %v862_v60 = vadd.f32 %v1854_v58, %v381_v53  ;;  %1953 = vmatprep.subr.bf16.mxu1 (!%p1574_p3), %v2175_v27  ;;  %v936_v51 = vpack.c.bf16 (!%p1574_p3), %v908_v44, %v907_v43  ;;  %v911_v55 = vld [vmem:[#allocation2 + $0x50] sm:$0xff] (!%p1574_p3) }
 0x1e3   : > { %v944_v52 = vpack.c.bf16 (!%p1574_p3), %v924_v46, %v923_v45  ;;  %v937_v53 = vpack.c.bf16 (!%p1574_p3), %v910_v48, %v909_v47  ;;  %v945_v54 = vpack.c.bf16 (!%p1574_p3), %v926_v50, %v925_v49  ;;  %v912_v56 = vld [vmem:[#allocation2 + $0x58] sm:$0xff] (!%p1574_p3)  ;;  %v927_v57 = vld [vmem:[#allocation2 + $0xd0] sm:$0xff] (!%p1574_p3) }
 0x1e4   : > { %878 = vst [vmem:[#allocation2 + $0x68] sm:$0xff] %v846_v59  ;;  %894 = vst [vmem:[#allocation2 + $0xe8] sm:$0xff] %v862_v60  ;;  %v1807_v61 = vpop.f32.mrb[28].mxu0  ;;  %v1855_v62 = vpop.f32.mrb[28].mxu1  ;;  %1894 = vmatpush3.bf16.msra.mxu0 (!%p1574_p3), %v2175_v27  ;;  %v928_v58 = vld [vmem:[#allocation2 + $0xd8] sm:$0xff] (!%p1574_p3) }
 0x1e5   : > { %v1808_v0 = vpop.f32.mrb[29].mxu0  ;;  %v1856_v2 = vpop.f32.mrb[29].mxu1  ;;  %1961 = vmatpush3.bf16.msra.mxu1 (!%p1574_p3), %v2175_v27  ;;  %1895 = vmatprep.subr.bf16.mxu0 (!%p1574_p3), %v2176_v28 }
 0x1e6   : > { %v1809_v3 = vadd.f32 %v1808_v0, %v1807_v61  ;;  %v1857_v4 = vadd.f32 %v1856_v2, %v1855_v62  ;;  %v1810_v5 = vpop.f32.mrb[30].mxu0  ;;  %v1858_v6 = vpop.f32.mrb[30].mxu1  ;;  %900 = sbr.rel (%p1574_p3) target bundleno = 746 (0x2ea), region = 60  ;;  %1954 = vmatprep.subr.bf16.mxu1 (!%p1574_p3), %v2176_v28  ;;  %v946_v0 = vpack.c.bf16 (!%p1574_p3), %v928_v58, %v927_v57 }
 0x1e7   : > { %v1811_v8 = vpop.f32.mrb[31].mxu0  ;;  %v1859_v10 = vpop.f32.mrb[31].mxu1 }
 0x1e8   : > { %v847_v11 = vadd.f32 %v1809_v3, %v366_v63  ;;  %v863_v12 = vadd.f32 %v1857_v4, %v382_v1  ;;  %v1812_v13 = vadd.f32 %v1811_v8, %v1810_v5  ;;  %v1860_v14 = vadd.f32 %v1859_v10, %v1858_v6  ;;  %1896 = vmatpush3.bf16.msra.mxu0 (!%p1574_p3), %v2176_v28 }
 0x1e9   : > { %1962 = vmatpush3.bf16.msra.mxu1 (!%p1574_p3), %v2176_v28  ;;  %1897 = vmatprep.subr.bf16.mxu0 (!%p1574_p3), %v2177_v29  ;;  %v913_v59 = vld [vmem:[#allocation2 + $0x60] sm:$0xff] (!%p1574_p3)  ;;  %v938_v63 = vpack.c.bf16 (!%p1574_p3), %v912_v56, %v911_v55 }
 0x1ea   : > { %879 = vst [vmem:[#allocation2 + $0x70] sm:$0xff] %v847_v11  ;;  %895 = vst [vmem:[#allocation2 + $0xf0] sm:$0xff] %v863_v12  ;;  %v848_v15 = vadd.f32 %v1812_v13, %v367_v7  ;;  %v864_v16 = vadd.f32 %v1860_v14, %v383_v9  ;;  %1955 = vmatprep.subr.bf16.mxu1 (!%p1574_p3), %v2177_v29  ;;  %v929_v61 = vld [vmem:[#allocation2 + $0xe0] sm:$0xff] (!%p1574_p3) }
 0x1eb   : > { %v914_v60 = vld [vmem:[#allocation2 + $0x68] sm:$0xff] (!%p1574_p3)  ;;  %v2779_v9 = vld [vmem:[#allocation9] ss:$0 sm:$0xff] (!%p1574_p3) }
 0x1ec   : > { %880 = vst [vmem:[#allocation2 + $0x78] sm:$0xff] %v848_v15  ;;  %896 = vst [vmem:[#allocation2 + $0xf8] sm:$0xff] %v864_v16  ;;  %1898 = vmatpush3.bf16.msra.mxu0 (!%p1574_p3), %v2177_v29  ;;  %v930_v62 = vld [vmem:[#allocation2 + $0xe8] sm:$0xff] (!%p1574_p3)  ;;  %v939_v1 = vpack.c.bf16 (!%p1574_p3), %v914_v60, %v913_v59 }
 0x1ed   : > { %1963 = vmatpush3.bf16.msra.mxu1 %v2177_v29  ;;  %1899 = vmatprep.subr.bf16.mxu0 %v2178_v30  ;;  %v947_v2 = vpack.c.bf16 %v930_v62, %v929_v61 }
 0x1ee   : > { %1956 = vmatprep.subr.bf16.mxu1 %v2178_v30 }
 0x1f0   : > { %1900 = vmatpush3.bf16.msra.mxu0 %v2178_v30 }
 0x1f1   : > { %1964 = vmatpush3.bf16.msra.mxu1 %v2178_v30  ;;  %v915_v3 = vld [vmem:[#allocation2 + $0x70] sm:$0xff] }
 0x1f2   : > { %v931_v5 = vld [vmem:[#allocation2 + $0xf0] sm:$0xff] }
 0x1f3   : > { %1902 = vmatmul.mubr.bf16.vlgmr.msra.gmra.mrb[0].mxu0 %v934_v39  ;;  %v916_v4 = vld [vmem:[#allocation2 + $0x78] sm:$0xff] }
 0x1f4   : > { %1918 = vmatmul.mubr.bf16.vlgmr.msra.gmra.mrb[0].mxu1 %v942_v40  ;;  %1905 = vmatprep.mubr.bf16.mxu0 %v935_v41  ;;  %v932_v6 = vld [vmem:[#allocation2 + $0xf8] sm:$0xff]  ;;  %v940_v7 = vpack.c.bf16 %v916_v4, %v915_v3 }
 0x1f5   : > { %1921 = vmatprep.mubr.bf16.mxu1 %v943_v42  ;;  %v948_v8 = vpack.c.bf16 %v932_v6, %v931_v5 }
 0x1fb   : > { %1906 = vmatmul.mubr.bf16.gmra.mrb[4].mxu0 %v936_v51 }
 0x1fc   : > { %1922 = vmatmul.mubr.bf16.gmra.mrb[4].mxu1 %v944_v52  ;;  %1909 = vmatprep.mubr.bf16.mxu0 %v937_v53 }
 0x1fd   : > { %1925 = vmatprep.mubr.bf16.mxu1 %v945_v54 }
 0x203   : > { %1910 = vmatmul.mubr.bf16.gmra.mrb[8].mxu0 %v938_v63 }
 0x204   : > { %1926 = vmatmul.mubr.bf16.gmra.mrb[8].mxu1 %v946_v0  ;;  %1913 = vmatprep.mubr.bf16.mxu0 %v939_v1 }
 0x205   : > { %1929 = vmatprep.mubr.bf16.mxu1 %v947_v2 }
 0x20b   : > { %1914 = vmatmul.mubr.bf16.gmra.mrb[12].mxu0 %v940_v7 }
 0x20c   : > { %1930 = vmatmul.mubr.bf16.gmra.mrb[12].mxu1 %v948_v8 }
 0x2c6   : > { %v1903_v10 = vpop.f32.mrb[0].mxu0 }
 0x2c7   : > { %v1919_v11 = vpop.f32.mrb[0].mxu1  ;;  %v1063_v12 = vadd.f32 %v1903_v10, %v2779_v9  ;;  %v1054_v14 = vpop.f32.mrb[1].mxu0 }
 0x2c8   : > { %v1127_v13 = vadd.f32 %v1919_v11, %v2779_v9  ;;  %v1118_v15 = vpop.f32.mrb[1].mxu1  ;;  %v1055_v16 = vadd.f32 %v2779_v9, %v1054_v14  ;;  %v1904_v18 = vpop.f32.mrb[2].mxu0 }
 0x2c9   : > { %v1119_v17 = vadd.f32 %v2779_v9, %v1118_v15  ;;  %v1920_v19 = vpop.f32.mrb[2].mxu1  ;;  %v1066_v20 = vadd.f32 %v1904_v18, %v2779_v9  ;;  %v1057_v22 = vpop.f32.mrb[3].mxu0  ;;  %v1183_v26 = vmax.f32 %v1063_v12, 0.0 }
 0x2ca   : > { %v1130_v21 = vadd.f32 %v1920_v19, %v2779_v9  ;;  %v1121_v23 = vpop.f32.mrb[3].mxu1  ;;  %v1058_v24 = vadd.f32 %v2779_v9, %v1057_v22  ;;  %v1199_v27 = vmax.f32 %v1127_v13, 0.0  ;;  %v1181_v30 = vmax.f32 %v1055_v16, 0.0 }
 0x2cb   : > { %v1122_v25 = vadd.f32 %v2779_v9, %v1121_v23  ;;  %v1184_v28 = vmax.f32 %v1066_v20, 0.0  ;;  %v1197_v31 = vmax.f32 %v1119_v17, 0.0 }
 0x2cc   : > { %v1200_v29 = vmax.f32 %v1130_v21, 0.0  ;;  %v1182_v32 = vmax.f32 %v1058_v24, 0.0 }
 0x2cd   : > { %v1198_v33 = vmax.f32 %v1122_v25, 0.0  ;;  %v1662_v34 = vpack.c.bf16 %v1184_v28, %v1183_v26 }
 0x2ce   : > { %v1702_v35 = vpack.c.bf16 %v1200_v29, %v1199_v27  ;;  %v1657_v36 = vpack.c.bf16 %v1182_v32, %v1181_v30  ;;  %v1907_v38 = vpop.f32.mrb[4].mxu0 }
 0x2cf   : > { %v1697_v37 = vpack.c.bf16 %v1198_v33, %v1197_v31  ;;  %v1923_v39 = vpop.f32.mrb[4].mxu1  ;;  %1734 = vst [vmem:[%s2724_s13 + $0x8] sm:$0xff] %v1662_v34   ;;  %v1079_v40 = vadd.f32 %v1907_v38, %v2779_v9  ;;  %v1070_v42 = vpop.f32.mrb[5].mxu0 }
 0x2d0   : > { %1742 = vst [vmem:[%s2724_s13 + $0x48] sm:$0xff] %v1702_v35   ;;  %v1143_v41 = vadd.f32 %v1923_v39, %v2779_v9  ;;  %v1134_v43 = vpop.f32.mrb[5].mxu1  ;;  %1658 = vst [vmem:[%s2724_s13] sm:$0xff] %v1657_v36   ;;  %v1071_v44 = vadd.f32 %v2779_v9, %v1070_v42  ;;  %v1908_v46 = vpop.f32.mrb[6].mxu0 }
 0x2d1   : > { %1741 = vst [vmem:[%s2724_s13 + $0x40] sm:$0xff] %v1697_v37   ;;  %v1135_v45 = vadd.f32 %v2779_v9, %v1134_v43  ;;  %v1924_v47 = vpop.f32.mrb[6].mxu1  ;;  %v1082_v48 = vadd.f32 %v1908_v46, %v2779_v9  ;;  %v1073_v50 = vpop.f32.mrb[7].mxu0  ;;  %v1187_v54 = vmax.f32 %v1079_v40, 0.0 }
 0x2d2   : > { %v1146_v49 = vadd.f32 %v1924_v47, %v2779_v9  ;;  %v1137_v51 = vpop.f32.mrb[7].mxu1  ;;  %v1074_v52 = vadd.f32 %v2779_v9, %v1073_v50  ;;  %v1203_v55 = vmax.f32 %v1143_v41, 0.0  ;;  %v1185_v58 = vmax.f32 %v1071_v44, 0.0 }
 0x2d3   : > { %v1138_v53 = vadd.f32 %v2779_v9, %v1137_v51  ;;  %v1188_v56 = vmax.f32 %v1082_v48, 0.0  ;;  %v1201_v59 = vmax.f32 %v1135_v45, 0.0 }
 0x2d4   : > { %v1204_v57 = vmax.f32 %v1146_v49, 0.0  ;;  %v1186_v60 = vmax.f32 %v1074_v52, 0.0 }
 0x2d5   : > { %v1202_v61 = vmax.f32 %v1138_v53, 0.0  ;;  %v1672_v62 = vpack.c.bf16 %v1188_v56, %v1187_v54 }
 0x2d6   : > { %v1712_v63 = vpack.c.bf16 %v1204_v57, %v1203_v55  ;;  %v1667_v0 = vpack.c.bf16 %v1186_v60, %v1185_v58  ;;  %v1911_v2 = vpop.f32.mrb[8].mxu0 }
 0x2d7   : > { %v1707_v1 = vpack.c.bf16 %v1202_v61, %v1201_v59  ;;  %v1927_v3 = vpop.f32.mrb[8].mxu1  ;;  %1736 = vst [vmem:[%s2724_s13 + $0x18] sm:$0xff] %v1672_v62   ;;  %v1095_v4 = vadd.f32 %v1911_v2, %v2779_v9  ;;  %v1086_v6 = vpop.f32.mrb[9].mxu0 }
 0x2d8   : > { %1744 = vst [vmem:[%s2724_s13 + $0x58] sm:$0xff] %v1712_v63   ;;  %v1159_v5 = vadd.f32 %v1927_v3, %v2779_v9  ;;  %v1150_v7 = vpop.f32.mrb[9].mxu1  ;;  %1735 = vst [vmem:[%s2724_s13 + $0x10] sm:$0xff] %v1667_v0   ;;  %v1087_v8 = vadd.f32 %v2779_v9, %v1086_v6  ;;  %v1912_v11 = vpop.f32.mrb[10].mxu0 }
 0x2d9   : > { %1743 = vst [vmem:[%s2724_s13 + $0x50] sm:$0xff] %v1707_v1   ;;  %v1151_v10 = vadd.f32 %v2779_v9, %v1150_v7  ;;  %v1928_v12 = vpop.f32.mrb[10].mxu1  ;;  %v1098_v13 = vadd.f32 %v1912_v11, %v2779_v9  ;;  %v1089_v15 = vpop.f32.mrb[11].mxu0  ;;  %v1191_v19 = vmax.f32 %v1095_v4, 0.0 }
 0x2da   : > { %v1162_v14 = vadd.f32 %v1928_v12, %v2779_v9  ;;  %v1153_v16 = vpop.f32.mrb[11].mxu1  ;;  %v1090_v17 = vadd.f32 %v2779_v9, %v1089_v15  ;;  %v1207_v20 = vmax.f32 %v1159_v5, 0.0  ;;  %v1189_v23 = vmax.f32 %v1087_v8, 0.0 }
 0x2db   : > { %v1154_v18 = vadd.f32 %v2779_v9, %v1153_v16  ;;  %v1192_v21 = vmax.f32 %v1098_v13, 0.0  ;;  %v1205_v24 = vmax.f32 %v1151_v10, 0.0 }
 0x2dc   : > { %v1208_v22 = vmax.f32 %v1162_v14, 0.0  ;;  %v1190_v25 = vmax.f32 %v1090_v17, 0.0 }
 0x2dd   : > { %v1206_v26 = vmax.f32 %v1154_v18, 0.0  ;;  %v1682_v27 = vpack.c.bf16 %v1192_v21, %v1191_v19 }
 0x2de   : > { %v1722_v28 = vpack.c.bf16 %v1208_v22, %v1207_v20  ;;  %v1677_v29 = vpack.c.bf16 %v1190_v25, %v1189_v23  ;;  %v1915_v31 = vpop.f32.mrb[12].mxu0 }
 0x2df   : > { %v1717_v30 = vpack.c.bf16 %v1206_v26, %v1205_v24  ;;  %v1931_v32 = vpop.f32.mrb[12].mxu1  ;;  %1738 = vst [vmem:[%s2724_s13 + $0x28] sm:$0xff] %v1682_v27   ;;  %v1111_v33 = vadd.f32 %v1915_v31, %v2779_v9  ;;  %v1102_v35 = vpop.f32.mrb[13].mxu0 }
 0x2e0   : > { %1746 = vst [vmem:[%s2724_s13 + $0x68] sm:$0xff] %v1722_v28   ;;  %v1175_v34 = vadd.f32 %v1931_v32, %v2779_v9  ;;  %v1166_v36 = vpop.f32.mrb[13].mxu1  ;;  %1737 = vst [vmem:[%s2724_s13 + $0x20] sm:$0xff] %v1677_v29   ;;  %v1103_v37 = vadd.f32 %v2779_v9, %v1102_v35  ;;  %v1916_v39 = vpop.f32.mrb[14].mxu0 }
 0x2e1   : > { %1745 = vst [vmem:[%s2724_s13 + $0x60] sm:$0xff] %v1717_v30   ;;  %v1167_v38 = vadd.f32 %v2779_v9, %v1166_v36  ;;  %v1932_v40 = vpop.f32.mrb[14].mxu1  ;;  %v1114_v41 = vadd.f32 %v1916_v39, %v2779_v9  ;;  %v1105_v43 = vpop.f32.mrb[15].mxu0  ;;  %v1195_v47 = vmax.f32 %v1111_v33, 0.0 }
 0x2e2   : > { %v1178_v42 = vadd.f32 %v1932_v40, %v2779_v9  ;;  %v1169_v44 = vpop.f32.mrb[15].mxu1  ;;  %v1106_v45 = vadd.f32 %v2779_v9, %v1105_v43  ;;  %v1211_v48 = vmax.f32 %v1175_v34, 0.0  ;;  %v1193_v51 = vmax.f32 %v1103_v37, 0.0 }
 0x2e3   : > { %v1170_v46 = vadd.f32 %v2779_v9, %v1169_v44  ;;  %v1196_v49 = vmax.f32 %v1114_v41, 0.0  ;;  %v1209_v52 = vmax.f32 %v1167_v38, 0.0 }
 0x2e4   : > { %v1212_v50 = vmax.f32 %v1178_v42, 0.0  ;;  %v1194_v53 = vmax.f32 %v1106_v45, 0.0 }
 0x2e5   : > { %v1210_v54 = vmax.f32 %v1170_v46, 0.0  ;;  %v1692_v55 = vpack.c.bf16 %v1196_v49, %v1195_v47 }
 0x2e6   : > { %v1732_v56 = vpack.c.bf16 %v1212_v50, %v1211_v48  ;;  %v1687_v57 = vpack.c.bf16 %v1194_v53, %v1193_v51 }
 0x2e7   : > { %v1727_v58 = vpack.c.bf16 %v1210_v54, %v1209_v52  ;;  %1740 = vst [vmem:[%s2724_s13 + $0x38] sm:$0xff] %v1692_v55  }
 0x2e8   : > { %1748 = vst [vmem:[%s2724_s13 + $0x78] sm:$0xff] %v1732_v56   ;;  %1739 = vst [vmem:[%s2724_s13 + $0x30] sm:$0xff] %v1687_v57  }
 0x2e9   : > { %1747 = vst [vmem:[%s2724_s13 + $0x70] sm:$0xff] %v1727_v58  }
 0x2ea PF: > { %s2943_s21 = sld [smem:[#allocation18_spill]]  ;;  %s1653_s8 = sshll.u32 %s2411_s22, 11 }
 0x2eb   : > { %s2944_s12 = sld [smem:[#allocation22_spill]]  ;;  %s1387_s28 = sshll.u32 %s2724_s13, 4  ;;  %s2836_s28 = int_to_ptr.vmem [resolvable:$true] %s1387_s28 }
 0x2ec   : > { %s2840_s11 = scalar_lea.sflag [#allocation5], %s272_s2  ;;  %s2293_s18 = scalar_lea.vmem %s2836_s28, 2048 }
 0x2ed   : > { %p2294_p6 = scmp.ne.s32.totalorder %s2836_s28, %s2293_s18  ;;  %s2435_s22 = smov [#allocation11]  }
 0x2ee   : > { %s2297_s30 = sshll.u32 %s2435_s22, 4  ;;  %s2298_s30 = int_to_ptr.vmem [resolvable:$false] %s2297_s30 }
 0x2ef   : > { %s2299_s15 = scalar_lea.vmem %s2298_s30, 4096  ;;  %p2300_p7 = scmp.lt.s32.totalorder %s2836_s28, %s2298_s30 }
 0x2f0   : > { %p2945_p9 = scmp.ne.s32.totalorder %s2943_s21, 0  ;;  %p2301_p10 = scmp.lt.s32.totalorder %s2299_s15, %s2293_s18 }
 0x2f1   : > { %s2833_s14 = scalar_lea.hbm %s2944_s12, %s1653_s8 }
 0x2f2   : > { %p2295_p0 = pnand %p2294_p6, %p2945_p9  ;;  %p2302_p13 = por %p2301_p10, %p2300_p7 }
 0x2f4   : > { %p2296_p5 = pneg %p2295_p0 }
 0x2f6   : > { %p2303_p2 = pnand %p2302_p13, %p2296_p5 }
 0x2f8   : > { %2306 = shalt.err (!%p2303_p2)
}
 0x2f9   : > { %s2307_s2 = scalar_lea.hbm %s2833_s14, 2048  ;;  %s2311_s29 = scalar_lea.hbm %s2944_s12, 6144 }
 0x2fa   : > { %p2308_p8 = scmp.ne.s32.totalorder %s2833_s14, %s2307_s2  ;;  %p2312_p4 = scmp.lt.u32.totalorder %s2833_s14, %s2944_s12 }
 0x2fb   : > { %p2313_p12 = scmp.lt.u32.totalorder %s2311_s29, %s2307_s2  ;;  %p2315_p6 = scmp.lt.u32.totalorder %s2307_s2, %s2833_s14 }
 0x2fc   : > { %p2309_p11 = pnand %p2308_p8, %p2945_p9 }
 0x2fd   : > { %p2314_p3 = por %p2313_p12, %p2312_p4 }
 0x2fe   : > { %p2310_p1 = pneg %p2309_p11 }
 0x2ff   : > { %p2316_p0 = por %p2315_p6, %p2314_p3 }
 0x301   : > { %p2317_p5 = pnand %p2316_p0, %p2310_p1 }
 0x303   : > { %2320 = shalt.err (!%p2317_p5)
}
 0x304   : > { %s2436_s4 = smov 64   ;;  %s2437_s8 = smov 4  }
 0x305   : > { %1980 = dma.vmem_to_hbm [thread:$0]  (%p2945_p9), %s2836_s28, 2048, %s2833_s14, %s2840_s11, %s2436_s4, %s2436_s4, %s2437_s8  }
 0x306 PF: > { %s2946_s25 = sld [smem:[#allocation17_spill]]  ;;  %s2947_s26 = sld [smem:[#allocation16_spill]] }
 0x307   : > { %s2948_s18 = sld [smem:[#allocation19_spill]] }
 0x30c   : > { %p2007_p7 = scmp.ge.s32.totalorder %s2946_s25, 2  ;;  %s1402_s22 = sand.u32 1, %s2947_s26  }
 0x30d   : > { %p2949_p10 = scmp.ne.s32.totalorder %s2948_s18, 0  ;;  %s1403_s30 = scalar_lea.sflag [#allocation5], %s1402_s22 }
 0x30f   : > { %p1997_p13 = pnand %p2007_p7, %p2949_p10 }
 0x311   : > { %2378 = dma.done.wait (!%p1997_p13), %s1403_s30, 2048  }
 0x312   : > { %2380 = vsyncadd (!%p1997_p13), %s1403_s30, 4294965248  ;;  %s22_s25 = sadd.s32 1, %s2946_s25   ;;  %s2950_s15 = smov %s2387_s16 }
 0x313   : > { %p19_p2 = scmp.ge.s32.totalorder %s22_s25, 11   ;;  %s2951_s16 = smov %s2391_s17 }
 0x314   : > { %s2952_s17 = smov %s2669_s10  ;;  %s2953_s18 = smov %s2399_s19 }
 0x315   : > { %s2954_s19 = smov %s2403_s20  ;;  %s2955_s20 = smov %s2674_s27 }
 0x316   : > { %s2956_s21 = smov %s2415_s23  ;;  %s2957_s22 = smov %s2419_s24 }
 0x317   : > { %s2958_s23 = smov %s2961_s1  ;;  %s2959_s24 = smov %s2965_s5 }
 0x318   :  { %21 = sbr.rel (!%p19_p2) target bundleno = 15 (0xf), region = 102 }
 0x31f   :  { %1408 = vsyncpa [#allocation4], 1 }
 0x320   :  { %1410 = vsyncpa [#allocation4 + $0x1], 1 }
 0x321   :  { %1411 = vsyncpa [#allocation7], 1 }
 0x322   :  { %1412 = vsyncpa [#allocation10], 1 }
 0x323   :  { %1413 = vsyncpa [#allocation5], 1 }
 0x324   :  { %1415 = vsyncpa [#allocation5 + $0x1], 1 }

</bundles_post_ra>
